<compile_context>
chip_gen: v5e
topology: v5e:2x2
jax: 0.10.0
libtpu: 0.0.40
codegen_flags: <defaults>
</compile_context>

<pallas_src>
import functools

import jax
import jax.numpy as jnp
from jax import lax
from jax.experimental import pallas as pl
from jax.experimental.pallas import tpu as pltpu


def _mha_kernel(num_heads, eps,
                q_ref, knode_ref, kedge_ref, ktime_ref, mask_ref,
                wqk_n_ref, wqk_e_ref, wqk_t_ref,
                wvr_n_ref, wvr_e_ref, wvr_t_ref,
                br_ref, gamma_ref, beta_ref,
                out_ref, scores_ref):
    H = num_heads
    f32 = jnp.float32

    q = q_ref[...].astype(f32)                               # (TB, Dq) (also the residual)
    kv_parts = (knode_ref[...].astype(f32),                  # (TB, N, nf)
                kedge_ref[...].astype(f32),                  # (TB, N, ef)
                ktime_ref[...].astype(f32))                  # (TB, N, tf)
    wqk_parts = (wqk_n_ref, wqk_e_ref, wqk_t_ref)            # each (H, Dq, d_p)
    wvr_parts = (wvr_n_ref, wvr_e_ref, wvr_t_ref)            # each (H, d_p, Dq)
    pad_neighbor = mask_ref[...] == 0.0                      # (TB, N) bool

    # ---- per-head masked softmax over neighbors -------------------------------------
    p_heads = []
    for h in range(H):
        s_h = None
        for kv_p, wqk_p in zip(kv_parts, wqk_parts):
            # fused (scale * Wq_h Wk_h^T) applied to q:  (TB, Dq) @ (Dq, d_p) on the MXU
            qk_ph = jnp.dot(q, wqk_p[h], preferred_element_type=f32)      # (TB, d_p)
            # score contribution: sum_k kv[b, n, k] * qk[b, k]    (VPU + lane reduce)
            part = jnp.sum(kv_p * qk_ph[:, None, :], axis=-1)             # (TB, N)
            s_h = part if s_h is None else s_h + part
        s_h = jnp.where(pad_neighbor, jnp.float32(-1e10), s_h)
        s_h = s_h - jnp.max(s_h, axis=-1, keepdims=True)
        e_h = jnp.exp(s_h)
        denom = jnp.sum(e_h, axis=-1, keepdims=True)
        p_h = e_h * pl.reciprocal(denom, approx=True)                     # (TB, N)
        p_heads.append(p_h)

    # ---- attention_scores output, already in final (B, H, N) layout ------------------
    scores = None
    for h, p_h in enumerate(p_heads):
        sel = (lax.broadcasted_iota(jnp.int32, (1, H, 1), 1) == h).astype(f32)
        term = p_h[:, None, :] * sel                                      # (TB, H, N)
        scores = term if scores is None else scores + term
    scores_ref[...] = scores.astype(scores_ref.dtype)

    # TODO(synk): dropout on attention_scores / residual_fc output skipped (eval mode).

    # ---- weighted value sum fused with residual_fc (Wv @ Wr pre-fused) ----------------
    y = None
    for h, p_h in enumerate(p_heads):
        for kv_p, wvr_p in zip(kv_parts, wvr_parts):
            wkv_ph = jnp.sum(kv_p * p_h[:, :, None], axis=1)              # (TB, d_p)
            o = jnp.dot(wkv_ph, wvr_p[h], preferred_element_type=f32)     # (TB, Dq) MXU
            y = o if y is None else y + o

    # ---- residual add + LayerNorm over the feature dimension --------------------------
    x = y + br_ref[...] + q                                               # (TB, Dq)
    mean = jnp.mean(x, axis=-1, keepdims=True)
    var = jnp.mean(jnp.square(x - mean), axis=-1, keepdims=True)
    x_hat = (x - mean) * lax.rsqrt(var + jnp.float32(eps))
    out_ref[...] = (x_hat * gamma_ref[...] + beta_ref[...]).astype(out_ref.dtype)


def multi_head_attention_pallas(node_features, node_time_features,
                                neighbor_node_features, neighbor_node_time_features,
                                neighbor_node_edge_features, neighbor_masks,
                                params, num_heads, pad_dim, block_b=256):
    B = node_features.shape[0]
    N = neighbor_node_features.shape[1]
    nf = neighbor_node_features.shape[2]
    ef = neighbor_node_edge_features.shape[2]
    tf = neighbor_node_time_features.shape[2]

    # --- query / residual (small (B, Dq) concat only; the big kv concat is avoided) ----
    q_parts = [node_features]
    if pad_dim:
        q_parts.append(jnp.zeros((B, pad_dim), node_features.dtype))
    q_parts.append(node_time_features[:, 0, :])
    q_in = jnp.concatenate(q_parts, axis=-1).astype(jnp.float32)          # (B, Dq)

    Dq = q_in.shape[-1]
    Dk = nf + ef + tf
    head_dim = Dq // num_heads
    scale = float(head_dim) ** (-0.5)

    # --- one-time weight fusion / re-layout (tiny, host/XLA side) ----------------------
    wq_h = params["wq"].reshape(Dq, num_heads, head_dim).transpose(1, 0, 2)   # (H, Dq, Dh)
    wk_h = params["wk"].reshape(Dk, num_heads, head_dim).transpose(1, 0, 2)   # (H, Dk, Dh)
    wv_h = params["wv"].reshape(Dk, num_heads, head_dim).transpose(1, 0, 2)   # (H, Dk, Dh)
    wr_h = params["wr"].reshape(num_heads, head_dim, Dq)                       # (H, Dh, Dq)
    wqk = scale * jnp.einsum('hqd,hkd->hqk', wq_h, wk_h)                       # (H, Dq, Dk)
    wvr = jnp.einsum('hkd,hdq->hkq', wv_h, wr_h)                               # (H, Dk, Dq)
    # split along the key-feature axis in the reference concat order [node, edge, time]
    wqk_n, wqk_e, wqk_t = wqk[:, :, :nf], wqk[:, :, nf:nf + ef], wqk[:, :, nf + ef:]
    wvr_n, wvr_e, wvr_t = wvr[:, :nf, :], wvr[:, nf:nf + ef, :], wvr[:, nf + ef:, :]

    mask = jnp.asarray(neighbor_masks, jnp.float32)                            # (B, N)

    # --- batch tiling ------------------------------------------------------------------
    tb = B if B <= block_b else block_b          # tb == B or a multiple of 8 (block_b=256)
    grid = (pl.cdiv(B, tb),)

    row2 = lambda i: (i, 0)
    row3 = lambda i: (i, 0, 0)
    rep2 = lambda i: (0, 0)
    rep3 = lambda i: (0, 0, 0)

    flops = 2 * B * num_heads * (Dq * Dk + 2 * N * Dk + Dk * Dq) + 12 * B * Dq
    bytes_accessed = 4 * (2 * B * Dq + B * N * (Dk + 1) + B * num_heads * N
                          + 2 * num_heads * Dq * Dk + 3 * Dq)
    cost = pl.CostEstimate(flops=flops,
                           transcendentals=B * num_heads * N,
                           bytes_accessed=bytes_accessed)

    kernel = functools.partial(_mha_kernel, num_heads, 1e-5)

    out, scores = pl.pallas_call(
        kernel,
        grid=grid,
        in_specs=[
            pl.BlockSpec((tb, Dq), row2),                 # q_in (residual)
            pl.BlockSpec((tb, N, nf), row3),              # neighbor node feats
            pl.BlockSpec((tb, N, ef), row3),              # neighbor edge feats
            pl.BlockSpec((tb, N, tf), row3),              # neighbor time feats
            pl.BlockSpec((tb, N), row2),                  # neighbor mask
            pl.BlockSpec((num_heads, Dq, nf), rep3),      # fused Wq Wk^T (node part)
            pl.BlockSpec((num_heads, Dq, ef), rep3),      # fused Wq Wk^T (edge part)
            pl.BlockSpec((num_heads, Dq, tf), rep3),      # fused Wq Wk^T (time part)
            pl.BlockSpec((num_heads, nf, Dq), rep3),      # fused Wv Wr (node part)
            pl.BlockSpec((num_heads, ef, Dq), rep3),      # fused Wv Wr (edge part)
            pl.BlockSpec((num_heads, tf, Dq), rep3),      # fused Wv Wr (time part)
            pl.BlockSpec((1, Dq), rep2),                  # residual_fc bias
            pl.BlockSpec((1, Dq), rep2),                  # layer_norm gamma
            pl.BlockSpec((1, Dq), rep2),                  # layer_norm beta
        ],
        out_specs=[
            pl.BlockSpec((tb, Dq), row2),
            pl.BlockSpec((tb, num_heads, N), row3),
        ],
        out_shape=[
            jax.ShapeDtypeStruct((B, Dq), jnp.float32),
            jax.ShapeDtypeStruct((B, num_heads, N), jnp.float32),
        ],
        compiler_params=pltpu.CompilerParams(
            dimension_semantics=("parallel",),
            vmem_limit_bytes=32 * 1024 * 1024),
        cost_estimate=cost,
    )(q_in, neighbor_node_features, neighbor_node_edge_features,
      neighbor_node_time_features, mask,
      wqk_n, wqk_e, wqk_t, wvr_n, wvr_e, wvr_t,
      params["br"], params["gamma"], params["beta"])

    return out, scores


def _reference_forward(node_features, node_time_features, neighbor_node_features,
                       neighbor_node_time_features, neighbor_node_edge_features,
                       neighbor_masks, params, num_heads, pad_dim):
    """Pure-JAX mirror of the torch forward (for a sanity check)."""
    B = node_features.shape[0]
    node_feat = node_features[:, None, :]
    if pad_dim:
        node_feat = jnp.concatenate(
            [node_feat, jnp.zeros((B, 1, pad_dim), node_feat.dtype)], axis=2)
    query = residual = jnp.concatenate([node_feat, node_time_features], axis=2)
    Dq = query.shape[-1]
    Dh = Dq // num_heads
    kv = jnp.concatenate([neighbor_node_features, neighbor_node_edge_features,
                          neighbor_node_time_features], axis=2)
    q = (query @ params["wq"]).reshape(B, 1, num_heads, Dh).transpose(0, 2, 1, 3)
    k = (kv @ params["wk"]).reshape(B, -1, num_heads, Dh).transpose(0, 2, 1, 3)
    v = (kv @ params["wv"]).reshape(B, -1, num_heads, Dh).transpose(0, 2, 1, 3)
    att = jnp.einsum('bhld,bhnd->bhln', q, k) * (float(Dh) ** -0.5)
    m = (jnp.asarray(neighbor_masks, jnp.float32) == 0.0)[:, None, None, :]
    att = jnp.where(m, -1e10, att)
    p = jax.nn.softmax(att, axis=-1)
    o = jnp.einsum('bhln,bhnd->bhld', p, v)
    o = o.transpose(0, 2, 1, 3).reshape(B, 1, num_heads * Dh)
    y = o @ params["wr"] + params["br"]
    x = y + residual
    mean = jnp.mean(x, -1, keepdims=True)
    var = jnp.mean(jnp.square(x - mean), -1, keepdims=True)
    out = (x - mean) / jnp.sqrt(var + 1e-5) * params["gamma"] + params["beta"]
    return out[:, 0, :], p[:, :, 0, :]


def init_params(key, node_feat_dim, edge_feat_dim, time_feat_dim, num_heads):
    query_dim = node_feat_dim + time_feat_dim
    pad_dim = 0 if query_dim % num_heads == 0 else num_heads - query_dim % num_heads
    query_dim += pad_dim
    key_dim = node_feat_dim + edge_feat_dim + time_feat_dim
    head_dim = query_dim // num_heads
    hd = num_heads * head_dim

    ks = jax.random.split(key, 5)

    def lin(k, fan_in, fan_out):  # torch nn.Linear default-style init, stored (in, out)
        bound = 1.0 / (fan_in ** 0.5)
        return jax.random.uniform(k, (fan_in, fan_out), jnp.float32, -bound, bound)

    params = dict(
        wq=lin(ks[0], query_dim, hd),
        wk=lin(ks[1], key_dim, hd),
        wv=lin(ks[2], key_dim, hd),
        wr=lin(ks[3], hd, query_dim),
        br=jax.random.uniform(ks[4], (1, query_dim), jnp.float32,
                              -1.0 / hd ** 0.5, 1.0 / hd ** 0.5),
        gamma=jnp.ones((1, query_dim), jnp.float32),
        beta=jnp.zeros((1, query_dim), jnp.float32),
    )
    return params, pad_dim, query_dim, key_dim


if __name__ == "__main__":
    node_feat_dim, edge_feat_dim, time_feat_dim = 16, 8, 8
    num_heads = 2
    B, N = 8, 8  # batch, num_neighbors

    root = jax.random.PRNGKey(0)
    kp, k1, k2, k3, k4, k5, k6 = jax.random.split(root, 7)

    params, pad_dim, query_dim, key_dim = init_params(
        kp, node_feat_dim, edge_feat_dim, time_feat_dim, num_heads)

    node_features = jax.random.normal(k1, (B, node_feat_dim), jnp.float32)
    node_time_features = jax.random.normal(k2, (B, 1, time_feat_dim), jnp.float32)
    neighbor_node_features = jax.random.normal(k3, (B, N, node_feat_dim), jnp.float32)
    neighbor_node_time_features = jax.random.normal(k4, (B, N, time_feat_dim), jnp.float32)
    neighbor_node_edge_features = jax.random.normal(k5, (B, N, edge_feat_dim), jnp.float32)
    neighbor_masks = (jax.random.uniform(k6, (B, N)) > 0.3).astype(jnp.float32)
    neighbor_masks = neighbor_masks.at[:, 0].set(1.0)  # ensure >=1 valid neighbor per row

    out, attn_scores = multi_head_attention_pallas(
        node_features, node_time_features,
        neighbor_node_features, neighbor_node_time_features,
        neighbor_node_edge_features, neighbor_masks,
        params, num_heads, pad_dim)
    jax.block_until_ready((out, attn_scores))

    assert out.shape == (B, query_dim)
    assert attn_scores.shape == (B, num_heads, N)

    # sanity: softmax rows sum to ~1 and kernel matches the pure-JAX reference
    row_sums = jnp.sum(attn_scores, axis=-1)
    assert bool(jnp.all(jnp.abs(row_sums - 1.0) < 1e-2))

    out_ref, scores_ref = _reference_forward(
        node_features, node_time_features, neighbor_node_features,
        neighbor_node_time_features, neighbor_node_edge_features,
        neighbor_masks, params, num_heads, pad_dim)
    assert float(jnp.max(jnp.abs(out - out_ref))) < 5e-2
    assert float(jnp.max(jnp.abs(attn_scores - scores_ref))) < 5e-2

    print("KERNEL_OK")
</pallas_src>

<mosaic_0001>
module attributes {stable_mosaic.version = 11 : i64} {
  func.func @_mha_kernel(%arg0: i32, %arg1: memref<8x24xf32, #tpu.memory_space<vmem>>, %arg2: memref<8x8x16xf32, #tpu.memory_space<vmem>>, %arg3: memref<8x8x8xf32, #tpu.memory_space<vmem>>, %arg4: memref<8x8x8xf32, #tpu.memory_space<vmem>>, %arg5: memref<8x8xf32, #tpu.memory_space<vmem>>, %arg6: memref<2x24x16xf32, #tpu.memory_space<vmem>>, %arg7: memref<2x24x8xf32, #tpu.memory_space<vmem>>, %arg8: memref<2x24x8xf32, #tpu.memory_space<vmem>>, %arg9: memref<2x16x24xf32, #tpu.memory_space<vmem>>, %arg10: memref<2x8x24xf32, #tpu.memory_space<vmem>>, %arg11: memref<2x8x24xf32, #tpu.memory_space<vmem>>, %arg12: memref<1x24xf32, #tpu.memory_space<vmem>>, %arg13: memref<1x24xf32, #tpu.memory_space<vmem>>, %arg14: memref<1x24xf32, #tpu.memory_space<vmem>>, %arg15: memref<8x24xf32, #tpu.memory_space<vmem>>, %arg16: memref<8x2x8xf32, #tpu.memory_space<vmem>>) attributes {dimension_semantics = [#tpu.dimension_semantics<parallel>], iteration_bounds = array<i64: 1>, scalar_prefetch = 0 : i64, scratch_operands = 0 : i64, tpu.core_type = #tpu.core_type<tc>, window_params = [{transform_indices = @transform_0, window_bounds = array<i64: 8, 24>}, {transform_indices = @transform_1, window_bounds = array<i64: 8, 8, 16>}, {transform_indices = @transform_2, window_bounds = array<i64: 8, 8, 8>}, {transform_indices = @transform_3, window_bounds = array<i64: 8, 8, 8>}, {transform_indices = @transform_4, window_bounds = array<i64: 8, 8>}, {pipeline_mode = #tpu.pipeline_mode<synchronous>, transform_indices = @transform_5, window_bounds = array<i64: 2, 24, 16>}, {pipeline_mode = #tpu.pipeline_mode<synchronous>, transform_indices = @transform_6, window_bounds = array<i64: 2, 24, 8>}, {pipeline_mode = #tpu.pipeline_mode<synchronous>, transform_indices = @transform_7, window_bounds = array<i64: 2, 24, 8>}, {pipeline_mode = #tpu.pipeline_mode<synchronous>, transform_indices = @transform_8, window_bounds = array<i64: 2, 16, 24>}, {pipeline_mode = #tpu.pipeline_mode<synchronous>, transform_indices = @transform_9, window_bounds = array<i64: 2, 8, 24>}, {pipeline_mode = #tpu.pipeline_mode<synchronous>, transform_indices = @transform_10, window_bounds = array<i64: 2, 8, 24>}, {pipeline_mode = #tpu.pipeline_mode<synchronous>, transform_indices = @transform_11, window_bounds = array<i64: 1, 24>}, {pipeline_mode = #tpu.pipeline_mode<synchronous>, transform_indices = @transform_12, window_bounds = array<i64: 1, 24>}, {pipeline_mode = #tpu.pipeline_mode<synchronous>, transform_indices = @transform_13, window_bounds = array<i64: 1, 24>}, {transform_indices = @transform_14, window_bounds = array<i64: 8, 24>}, {transform_indices = @transform_15, window_bounds = array<i64: 8, 2, 8>}]} {
    %c0 = arith.constant 0 : index
    %c0_0 = arith.constant 0 : index
    %0 = vector.load %arg1[%c0, %c0_0] : memref<8x24xf32, #tpu.memory_space<vmem>>, vector<8x24xf32>
    %c0_1 = arith.constant 0 : index
    %c0_2 = arith.constant 0 : index
    %c0_3 = arith.constant 0 : index
    %1 = vector.load %arg2[%c0_1, %c0_2, %c0_3] : memref<8x8x16xf32, #tpu.memory_space<vmem>>, vector<8x8x16xf32>
    %c0_4 = arith.constant 0 : index
    %c0_5 = arith.constant 0 : index
    %c0_6 = arith.constant 0 : index
    %2 = vector.load %arg3[%c0_4, %c0_5, %c0_6] : memref<8x8x8xf32, #tpu.memory_space<vmem>>, vector<8x8x8xf32>
    %c0_7 = arith.constant 0 : index
    %c0_8 = arith.constant 0 : index
    %c0_9 = arith.constant 0 : index
    %3 = vector.load %arg4[%c0_7, %c0_8, %c0_9] : memref<8x8x8xf32, #tpu.memory_space<vmem>>, vector<8x8x8xf32>
    %c0_10 = arith.constant 0 : index
    %c0_11 = arith.constant 0 : index
    %4 = vector.load %arg5[%c0_10, %c0_11] : memref<8x8xf32, #tpu.memory_space<vmem>>, vector<8x8xf32>
    %cst = arith.constant 0.000000e+00 : f32
    %5 = vector.broadcast %cst : f32 to vector<8x8xf32>
    %6 = arith.cmpf oeq, %4, %5 : vector<8x8xf32>
    %c0_12 = arith.constant 0 : index
    %c0_13 = arith.constant 0 : index
    %c0_14 = arith.constant 0 : index
    %7 = vector.load %arg6[%c0_12, %c0_13, %c0_14] : memref<2x24x16xf32, #tpu.memory_space<vmem>>, vector<1x24x16xf32>
    %8 = vector.shape_cast %7 : vector<1x24x16xf32> to vector<24x16xf32>
    %cst_15 = arith.constant dense<0.000000e+00> : vector<8x16xf32>
    %9 = tpu.matmul %0, %8, %cst_15 {dimension_numbers = #tpu.dot_dimension_numbers<[1], [0], [0], [1], [0, 0, 1, 1], [], []>} : vector<8x24xf32>, vector<24x16xf32>, vector<8x16xf32> -> vector<8x16xf32>
    %10 = vector.shape_cast %9 : vector<8x16xf32> to vector<8x1x16xf32>
    %11 = vector.broadcast %10 : vector<8x1x16xf32> to vector<8x8x16xf32>
    %12 = arith.mulf %1, %11 : vector<8x8x16xf32>
    %cst_16 = arith.constant dense<0.000000e+00> : vector<8x8xf32>
    %13 = vector.multi_reduction <add>, %12, %cst_16 [2] : vector<8x8x16xf32> to vector<8x8xf32>
    %c0_17 = arith.constant 0 : index
    %c0_18 = arith.constant 0 : index
    %c0_19 = arith.constant 0 : index
    %14 = vector.load %arg7[%c0_17, %c0_18, %c0_19] : memref<2x24x8xf32, #tpu.memory_space<vmem>>, vector<1x24x8xf32>
    %15 = vector.shape_cast %14 : vector<1x24x8xf32> to vector<24x8xf32>
    %cst_20 = arith.constant dense<0.000000e+00> : vector<8x8xf32>
    %16 = tpu.matmul %0, %15, %cst_20 {dimension_numbers = #tpu.dot_dimension_numbers<[1], [0], [0], [1], [0, 0, 1, 1], [], []>} : vector<8x24xf32>, vector<24x8xf32>, vector<8x8xf32> -> vector<8x8xf32>
    %17 = vector.shape_cast %16 : vector<8x8xf32> to vector<8x1x8xf32>
    %18 = vector.broadcast %17 : vector<8x1x8xf32> to vector<8x8x8xf32>
    %19 = arith.mulf %2, %18 : vector<8x8x8xf32>
    %cst_21 = arith.constant dense<0.000000e+00> : vector<8x8xf32>
    %20 = vector.multi_reduction <add>, %19, %cst_21 [2] : vector<8x8x8xf32> to vector<8x8xf32>
    %21 = arith.addf %13, %20 : vector<8x8xf32>
    %c0_22 = arith.constant 0 : index
    %c0_23 = arith.constant 0 : index
    %c0_24 = arith.constant 0 : index
    %22 = vector.load %arg8[%c0_22, %c0_23, %c0_24] : memref<2x24x8xf32, #tpu.memory_space<vmem>>, vector<1x24x8xf32>
    %23 = vector.shape_cast %22 : vector<1x24x8xf32> to vector<24x8xf32>
    %cst_25 = arith.constant dense<0.000000e+00> : vector<8x8xf32>
    %24 = tpu.matmul %0, %23, %cst_25 {dimension_numbers = #tpu.dot_dimension_numbers<[1], [0], [0], [1], [0, 0, 1, 1], [], []>} : vector<8x24xf32>, vector<24x8xf32>, vector<8x8xf32> -> vector<8x8xf32>
    %25 = vector.shape_cast %24 : vector<8x8xf32> to vector<8x1x8xf32>
    %26 = vector.broadcast %25 : vector<8x1x8xf32> to vector<8x8x8xf32>
    %27 = arith.mulf %3, %26 : vector<8x8x8xf32>
    %cst_26 = arith.constant dense<0.000000e+00> : vector<8x8xf32>
    %28 = vector.multi_reduction <add>, %27, %cst_26 [2] : vector<8x8x8xf32> to vector<8x8xf32>
    %29 = arith.addf %21, %28 : vector<8x8xf32>
    %cst_27 = arith.constant -1.000000e+10 : f32
    %30 = vector.broadcast %cst_27 : f32 to vector<8x8xf32>
    %31 = arith.select %6, %30, %29 : vector<8x8xi1>, vector<8x8xf32>
    %cst_28 = arith.constant dense<0xFF800000> : vector<8xf32>
    %32 = vector.multi_reduction <maximumf>, %31, %cst_28 [1] : vector<8x8xf32> to vector<8xf32>
    %33 = vector.shape_cast %32 : vector<8xf32> to vector<8x1xf32>
    %34 = vector.broadcast %33 : vector<8x1xf32> to vector<8x8xf32>
    %35 = arith.subf %31, %34 : vector<8x8xf32>
    %36 = math.exp %35 : vector<8x8xf32>
    %cst_29 = arith.constant dense<0.000000e+00> : vector<8xf32>
    %37 = vector.multi_reduction <add>, %36, %cst_29 [1] : vector<8x8xf32> to vector<8xf32>
    %38 = vector.shape_cast %37 : vector<8xf32> to vector<8x1xf32>
    %39 = tpu.reciprocal %38 {approx = true} : vector<8x1xf32> -> vector<8x1xf32>
    %40 = vector.broadcast %39 : vector<8x1xf32> to vector<8x8xf32>
    %41 = arith.mulf %36, %40 : vector<8x8xf32>
    %c1 = arith.constant 1 : index
    %c0_30 = arith.constant 0 : index
    %c0_31 = arith.constant 0 : index
    %42 = vector.load %arg6[%c1, %c0_30, %c0_31] : memref<2x24x16xf32, #tpu.memory_space<vmem>>, vector<1x24x16xf32>
    %43 = vector.shape_cast %42 : vector<1x24x16xf32> to vector<24x16xf32>
    %cst_32 = arith.constant dense<0.000000e+00> : vector<8x16xf32>
    %44 = tpu.matmul %0, %43, %cst_32 {dimension_numbers = #tpu.dot_dimension_numbers<[1], [0], [0], [1], [0, 0, 1, 1], [], []>} : vector<8x24xf32>, vector<24x16xf32>, vector<8x16xf32> -> vector<8x16xf32>
    %45 = vector.shape_cast %44 : vector<8x16xf32> to vector<8x1x16xf32>
    %46 = vector.broadcast %45 : vector<8x1x16xf32> to vector<8x8x16xf32>
    %47 = arith.mulf %1, %46 : vector<8x8x16xf32>
    %cst_33 = arith.constant dense<0.000000e+00> : vector<8x8xf32>
    %48 = vector.multi_reduction <add>, %47, %cst_33 [2] : vector<8x8x16xf32> to vector<8x8xf32>
    %c1_34 = arith.constant 1 : index
    %c0_35 = arith.constant 0 : index
    %c0_36 = arith.constant 0 : index
    %49 = vector.load %arg7[%c1_34, %c0_35, %c0_36] : memref<2x24x8xf32, #tpu.memory_space<vmem>>, vector<1x24x8xf32>
    %50 = vector.shape_cast %49 : vector<1x24x8xf32> to vector<24x8xf32>
    %cst_37 = arith.constant dense<0.000000e+00> : vector<8x8xf32>
    %51 = tpu.matmul %0, %50, %cst_37 {dimension_numbers = #tpu.dot_dimension_numbers<[1], [0], [0], [1], [0, 0, 1, 1], [], []>} : vector<8x24xf32>, vector<24x8xf32>, vector<8x8xf32> -> vector<8x8xf32>
    %52 = vector.shape_cast %51 : vector<8x8xf32> to vector<8x1x8xf32>
    %53 = vector.broadcast %52 : vector<8x1x8xf32> to vector<8x8x8xf32>
    %54 = arith.mulf %2, %53 : vector<8x8x8xf32>
    %cst_38 = arith.constant dense<0.000000e+00> : vector<8x8xf32>
    %55 = vector.multi_reduction <add>, %54, %cst_38 [2] : vector<8x8x8xf32> to vector<8x8xf32>
    %56 = arith.addf %48, %55 : vector<8x8xf32>
    %c1_39 = arith.constant 1 : index
    %c0_40 = arith.constant 0 : index
    %c0_41 = arith.constant 0 : index
    %57 = vector.load %arg8[%c1_39, %c0_40, %c0_41] : memref<2x24x8xf32, #tpu.memory_space<vmem>>, vector<1x24x8xf32>
    %58 = vector.shape_cast %57 : vector<1x24x8xf32> to vector<24x8xf32>
    %cst_42 = arith.constant dense<0.000000e+00> : vector<8x8xf32>
    %59 = tpu.matmul %0, %58, %cst_42 {dimension_numbers = #tpu.dot_dimension_numbers<[1], [0], [0], [1], [0, 0, 1, 1], [], []>} : vector<8x24xf32>, vector<24x8xf32>, vector<8x8xf32> -> vector<8x8xf32>
    %60 = vector.shape_cast %59 : vector<8x8xf32> to vector<8x1x8xf32>
    %61 = vector.broadcast %60 : vector<8x1x8xf32> to vector<8x8x8xf32>
    %62 = arith.mulf %3, %61 : vector<8x8x8xf32>
    %cst_43 = arith.constant dense<0.000000e+00> : vector<8x8xf32>
    %63 = vector.multi_reduction <add>, %62, %cst_43 [2] : vector<8x8x8xf32> to vector<8x8xf32>
    %64 = arith.addf %56, %63 : vector<8x8xf32>
    %cst_44 = arith.constant -1.000000e+10 : f32
    %65 = vector.broadcast %cst_44 : f32 to vector<8x8xf32>
    %66 = arith.select %6, %65, %64 : vector<8x8xi1>, vector<8x8xf32>
    %cst_45 = arith.constant dense<0xFF800000> : vector<8xf32>
    %67 = vector.multi_reduction <maximumf>, %66, %cst_45 [1] : vector<8x8xf32> to vector<8xf32>
    %68 = vector.shape_cast %67 : vector<8xf32> to vector<8x1xf32>
    %69 = vector.broadcast %68 : vector<8x1xf32> to vector<8x8xf32>
    %70 = arith.subf %66, %69 : vector<8x8xf32>
    %71 = math.exp %70 : vector<8x8xf32>
    %cst_46 = arith.constant dense<0.000000e+00> : vector<8xf32>
    %72 = vector.multi_reduction <add>, %71, %cst_46 [1] : vector<8x8xf32> to vector<8xf32>
    %73 = vector.shape_cast %72 : vector<8xf32> to vector<8x1xf32>
    %74 = tpu.reciprocal %73 {approx = true} : vector<8x1xf32> -> vector<8x1xf32>
    %75 = vector.broadcast %74 : vector<8x1xf32> to vector<8x8xf32>
    %76 = arith.mulf %71, %75 : vector<8x8xf32>
    %77 = tpu.iota {dimensions = array<i32: 1>} : vector<1x2x1xi32>
    %c0_i32 = arith.constant 0 : i32
    %78 = vector.broadcast %c0_i32 : i32 to vector<1x2x1xi32>
    %79 = arith.cmpi eq, %77, %78 : vector<1x2x1xi32>
    %80 = arith.extui %79 : vector<1x2x1xi1> to vector<1x2x1xi32>
    %81 = arith.sitofp %80 : vector<1x2x1xi32> to vector<1x2x1xf32>
    %82 = vector.shape_cast %41 : vector<8x8xf32> to vector<8x1x8xf32>
    %83 = vector.broadcast %82 : vector<8x1x8xf32> to vector<8x2x8xf32>
    %84 = vector.broadcast %81 : vector<1x2x1xf32> to vector<8x2x8xf32>
    %85 = arith.mulf %83, %84 : vector<8x2x8xf32>
    %86 = tpu.iota {dimensions = array<i32: 1>} : vector<1x2x1xi32>
    %c1_i32 = arith.constant 1 : i32
    %87 = vector.broadcast %c1_i32 : i32 to vector<1x2x1xi32>
    %88 = arith.cmpi eq, %86, %87 : vector<1x2x1xi32>
    %89 = arith.extui %88 : vector<1x2x1xi1> to vector<1x2x1xi32>
    %90 = arith.sitofp %89 : vector<1x2x1xi32> to vector<1x2x1xf32>
    %91 = vector.shape_cast %76 : vector<8x8xf32> to vector<8x1x8xf32>
    %92 = vector.broadcast %91 : vector<8x1x8xf32> to vector<8x2x8xf32>
    %93 = vector.broadcast %90 : vector<1x2x1xf32> to vector<8x2x8xf32>
    %94 = arith.mulf %92, %93 : vector<8x2x8xf32>
    %95 = arith.addf %85, %94 : vector<8x2x8xf32>
    %c0_47 = arith.constant 0 : index
    %c0_48 = arith.constant 0 : index
    %c0_49 = arith.constant 0 : index
    %96 = vector.load %arg16[%c0_47, %c0_48, %c0_49] : memref<8x2x8xf32, #tpu.memory_space<vmem>>, vector<8x2x8xf32>
    tpu.vector_store %arg16[%c0_47, %c0_48, %c0_49], %95 {strides = array<i32>} : memref<8x2x8xf32, #tpu.memory_space<vmem>>, vector<8x2x8xf32>,
    %97 = vector.shape_cast %41 : vector<8x8xf32> to vector<8x8x1xf32>
    %98 = vector.broadcast %97 : vector<8x8x1xf32> to vector<8x8x16xf32>
    %99 = arith.mulf %1, %98 : vector<8x8x16xf32>
    %cst_50 = arith.constant dense<0.000000e+00> : vector<8x16xf32>
    %100 = vector.multi_reduction <add>, %99, %cst_50 [1] : vector<8x8x16xf32> to vector<8x16xf32>
    %c0_51 = arith.constant 0 : index
    %c0_52 = arith.constant 0 : index
    %c0_53 = arith.constant 0 : index
    %101 = vector.load %arg9[%c0_51, %c0_52, %c0_53] : memref<2x16x24xf32, #tpu.memory_space<vmem>>, vector<1x16x24xf32>
    %102 = vector.shape_cast %101 : vector<1x16x24xf32> to vector<16x24xf32>
    %cst_54 = arith.constant dense<0.000000e+00> : vector<8x24xf32>
    %103 = tpu.matmul %100, %102, %cst_54 {dimension_numbers = #tpu.dot_dimension_numbers<[1], [0], [0], [1], [0, 0, 1, 1], [], []>} : vector<8x16xf32>, vector<16x24xf32>, vector<8x24xf32> -> vector<8x24xf32>
    %104 = vector.shape_cast %41 : vector<8x8xf32> to vector<8x8x1xf32>
    %105 = vector.broadcast %104 : vector<8x8x1xf32> to vector<8x8x8xf32>
    %106 = arith.mulf %2, %105 : vector<8x8x8xf32>
    %cst_55 = arith.constant dense<0.000000e+00> : vector<8x8xf32>
    %107 = vector.multi_reduction <add>, %106, %cst_55 [1] : vector<8x8x8xf32> to vector<8x8xf32>
    %c0_56 = arith.constant 0 : index
    %c0_57 = arith.constant 0 : index
    %c0_58 = arith.constant 0 : index
    %108 = vector.load %arg10[%c0_56, %c0_57, %c0_58] : memref<2x8x24xf32, #tpu.memory_space<vmem>>, vector<1x8x24xf32>
    %109 = vector.shape_cast %108 : vector<1x8x24xf32> to vector<8x24xf32>
    %cst_59 = arith.constant dense<0.000000e+00> : vector<8x24xf32>
    %110 = tpu.matmul %107, %109, %cst_59 {dimension_numbers = #tpu.dot_dimension_numbers<[1], [0], [0], [1], [0, 0, 1, 1], [], []>} : vector<8x8xf32>, vector<8x24xf32>, vector<8x24xf32> -> vector<8x24xf32>
    %111 = arith.addf %103, %110 : vector<8x24xf32>
    %112 = vector.shape_cast %41 : vector<8x8xf32> to vector<8x8x1xf32>
    %113 = vector.broadcast %112 : vector<8x8x1xf32> to vector<8x8x8xf32>
    %114 = arith.mulf %3, %113 : vector<8x8x8xf32>
    %cst_60 = arith.constant dense<0.000000e+00> : vector<8x8xf32>
    %115 = vector.multi_reduction <add>, %114, %cst_60 [1] : vector<8x8x8xf32> to vector<8x8xf32>
    %c0_61 = arith.constant 0 : index
    %c0_62 = arith.constant 0 : index
    %c0_63 = arith.constant 0 : index
    %116 = vector.load %arg11[%c0_61, %c0_62, %c0_63] : memref<2x8x24xf32, #tpu.memory_space<vmem>>, vector<1x8x24xf32>
    %117 = vector.shape_cast %116 : vector<1x8x24xf32> to vector<8x24xf32>
    %cst_64 = arith.constant dense<0.000000e+00> : vector<8x24xf32>
    %118 = tpu.matmul %115, %117, %cst_64 {dimension_numbers = #tpu.dot_dimension_numbers<[1], [0], [0], [1], [0, 0, 1, 1], [], []>} : vector<8x8xf32>, vector<8x24xf32>, vector<8x24xf32> -> vector<8x24xf32>
    %119 = arith.addf %111, %118 : vector<8x24xf32>
    %120 = vector.shape_cast %76 : vector<8x8xf32> to vector<8x8x1xf32>
    %121 = vector.broadcast %120 : vector<8x8x1xf32> to vector<8x8x16xf32>
    %122 = arith.mulf %1, %121 : vector<8x8x16xf32>
    %cst_65 = arith.constant dense<0.000000e+00> : vector<8x16xf32>
    %123 = vector.multi_reduction <add>, %122, %cst_65 [1] : vector<8x8x16xf32> to vector<8x16xf32>
    %c1_66 = arith.constant 1 : index
    %c0_67 = arith.constant 0 : index
    %c0_68 = arith.constant 0 : index
    %124 = vector.load %arg9[%c1_66, %c0_67, %c0_68] : memref<2x16x24xf32, #tpu.memory_space<vmem>>, vector<1x16x24xf32>
    %125 = vector.shape_cast %124 : vector<1x16x24xf32> to vector<16x24xf32>
    %cst_69 = arith.constant dense<0.000000e+00> : vector<8x24xf32>
    %126 = tpu.matmul %123, %125, %cst_69 {dimension_numbers = #tpu.dot_dimension_numbers<[1], [0], [0], [1], [0, 0, 1, 1], [], []>} : vector<8x16xf32>, vector<16x24xf32>, vector<8x24xf32> -> vector<8x24xf32>
    %127 = arith.addf %119, %126 : vector<8x24xf32>
    %128 = vector.shape_cast %76 : vector<8x8xf32> to vector<8x8x1xf32>
    %129 = vector.broadcast %128 : vector<8x8x1xf32> to vector<8x8x8xf32>
    %130 = arith.mulf %2, %129 : vector<8x8x8xf32>
    %cst_70 = arith.constant dense<0.000000e+00> : vector<8x8xf32>
    %131 = vector.multi_reduction <add>, %130, %cst_70 [1] : vector<8x8x8xf32> to vector<8x8xf32>
    %c1_71 = arith.constant 1 : index
    %c0_72 = arith.constant 0 : index
    %c0_73 = arith.constant 0 : index
    %132 = vector.load %arg10[%c1_71, %c0_72, %c0_73] : memref<2x8x24xf32, #tpu.memory_space<vmem>>, vector<1x8x24xf32>
    %133 = vector.shape_cast %132 : vector<1x8x24xf32> to vector<8x24xf32>
    %cst_74 = arith.constant dense<0.000000e+00> : vector<8x24xf32>
    %134 = tpu.matmul %131, %133, %cst_74 {dimension_numbers = #tpu.dot_dimension_numbers<[1], [0], [0], [1], [0, 0, 1, 1], [], []>} : vector<8x8xf32>, vector<8x24xf32>, vector<8x24xf32> -> vector<8x24xf32>
    %135 = arith.addf %127, %134 : vector<8x24xf32>
    %136 = vector.shape_cast %76 : vector<8x8xf32> to vector<8x8x1xf32>
    %137 = vector.broadcast %136 : vector<8x8x1xf32> to vector<8x8x8xf32>
    %138 = arith.mulf %3, %137 : vector<8x8x8xf32>
    %cst_75 = arith.constant dense<0.000000e+00> : vector<8x8xf32>
    %139 = vector.multi_reduction <add>, %138, %cst_75 [1] : vector<8x8x8xf32> to vector<8x8xf32>
    %c1_76 = arith.constant 1 : index
    %c0_77 = arith.constant 0 : index
    %c0_78 = arith.constant 0 : index
    %140 = vector.load %arg11[%c1_76, %c0_77, %c0_78] : memref<2x8x24xf32, #tpu.memory_space<vmem>>, vector<1x8x24xf32>
    %141 = vector.shape_cast %140 : vector<1x8x24xf32> to vector<8x24xf32>
    %cst_79 = arith.constant dense<0.000000e+00> : vector<8x24xf32>
    %142 = tpu.matmul %139, %141, %cst_79 {dimension_numbers = #tpu.dot_dimension_numbers<[1], [0], [0], [1], [0, 0, 1, 1], [], []>} : vector<8x8xf32>, vector<8x24xf32>, vector<8x24xf32> -> vector<8x24xf32>
    %143 = arith.addf %135, %142 : vector<8x24xf32>
    %c0_80 = arith.constant 0 : index
    %c0_81 = arith.constant 0 : index
    %144 = vector.load %arg12[%c0_80, %c0_81] : memref<1x24xf32, #tpu.memory_space<vmem>>, vector<1x24xf32>
    %145 = vector.broadcast %144 : vector<1x24xf32> to vector<8x24xf32>
    %146 = arith.addf %143, %145 : vector<8x24xf32>
    %147 = arith.addf %146, %0 : vector<8x24xf32>
    %cst_82 = arith.constant dense<0.000000e+00> : vector<8xf32>
    %148 = vector.multi_reduction <add>, %147, %cst_82 [1] : vector<8x24xf32> to vector<8xf32>
    %149 = vector.shape_cast %148 : vector<8xf32> to vector<8x1xf32>
    %cst_83 = arith.constant 2.400000e+01 : f32
    %150 = vector.broadcast %cst_83 : f32 to vector<8x1xf32>
    %151 = arith.divf %149, %150 : vector<8x1xf32>
    %152 = vector.broadcast %151 : vector<8x1xf32> to vector<8x24xf32>
    %153 = arith.subf %147, %152 : vector<8x24xf32>
    %154 = arith.mulf %153, %153 : vector<8x24xf32>
    %cst_84 = arith.constant dense<0.000000e+00> : vector<8xf32>
    %155 = vector.multi_reduction <add>, %154, %cst_84 [1] : vector<8x24xf32> to vector<8xf32>
    %156 = vector.shape_cast %155 : vector<8xf32> to vector<8x1xf32>
    %cst_85 = arith.constant 2.400000e+01 : f32
    %157 = vector.broadcast %cst_85 : f32 to vector<8x1xf32>
    %158 = arith.divf %156, %157 : vector<8x1xf32>
    %159 = vector.broadcast %151 : vector<8x1xf32> to vector<8x24xf32>
    %160 = arith.subf %147, %159 : vector<8x24xf32>
    %cst_86 = arith.constant 9.99999974E-6 : f32
    %161 = vector.broadcast %cst_86 : f32 to vector<8x1xf32>
    %162 = arith.addf %158, %161 : vector<8x1xf32>
    %163 = math.rsqrt %162 : vector<8x1xf32>
    %164 = vector.broadcast %163 : vector<8x1xf32> to vector<8x24xf32>
    %165 = arith.mulf %160, %164 : vector<8x24xf32>
    %c0_87 = arith.constant 0 : index
    %c0_88 = arith.constant 0 : index
    %166 = vector.load %arg13[%c0_87, %c0_88] : memref<1x24xf32, #tpu.memory_space<vmem>>, vector<1x24xf32>
    %167 = vector.broadcast %166 : vector<1x24xf32> to vector<8x24xf32>
    %168 = arith.mulf %165, %167 : vector<8x24xf32>
    %c0_89 = arith.constant 0 : index
    %c0_90 = arith.constant 0 : index
    %169 = vector.load %arg14[%c0_89, %c0_90] : memref<1x24xf32, #tpu.memory_space<vmem>>, vector<1x24xf32>
    %170 = vector.broadcast %169 : vector<1x24xf32> to vector<8x24xf32>
    %171 = arith.addf %168, %170 : vector<8x24xf32>
    %c0_91 = arith.constant 0 : index
    %c0_92 = arith.constant 0 : index
    %172 = vector.load %arg15[%c0_91, %c0_92] : memref<8x24xf32, #tpu.memory_space<vmem>>, vector<8x24xf32>
    tpu.vector_store %arg15[%c0_91, %c0_92], %171 {strides = array<i32>} : memref<8x24xf32, #tpu.memory_space<vmem>>, vector<8x24xf32>,
    return
  }
  func.func @transform_0(%arg0: i32) -> (i32, i32) {
    %c0_i32 = arith.constant 0 : i32
    %c0_i32_0 = arith.constant 0 : i32
    return %arg0, %c0_i32 : i32, i32
  }
  func.func @transform_1(%arg0: i32) -> (i32, i32, i32) {
    %c0_i32 = arith.constant 0 : i32
    %c0_i32_0 = arith.constant 0 : i32
    %c0_i32_1 = arith.constant 0 : i32
    return %arg0, %c0_i32, %c0_i32_0 : i32, i32, i32
  }
  func.func @transform_2(%arg0: i32) -> (i32, i32, i32) {
    %c0_i32 = arith.constant 0 : i32
    %c0_i32_0 = arith.constant 0 : i32
    %c0_i32_1 = arith.constant 0 : i32
    return %arg0, %c0_i32, %c0_i32_0 : i32, i32, i32
  }
  func.func @transform_3(%arg0: i32) -> (i32, i32, i32) {
    %c0_i32 = arith.constant 0 : i32
    %c0_i32_0 = arith.constant 0 : i32
    %c0_i32_1 = arith.constant 0 : i32
    return %arg0, %c0_i32, %c0_i32_0 : i32, i32, i32
  }
  func.func @transform_4(%arg0: i32) -> (i32, i32) {
    %c0_i32 = arith.constant 0 : i32
    %c0_i32_0 = arith.constant 0 : i32
    return %arg0, %c0_i32 : i32, i32
  }
  func.func @transform_5(%arg0: i32) -> (i32, i32, i32) {
    %c0_i32 = arith.constant 0 : i32
    %c0_i32_0 = arith.constant 0 : i32
    %c0_i32_1 = arith.constant 0 : i32
    %c0_i32_2 = arith.constant 0 : i32
    return %c0_i32, %c0_i32_0, %c0_i32_1 : i32, i32, i32
  }
  func.func @transform_6(%arg0: i32) -> (i32, i32, i32) {
    %c0_i32 = arith.constant 0 : i32
    %c0_i32_0 = arith.constant 0 : i32
    %c0_i32_1 = arith.constant 0 : i32
    %c0_i32_2 = arith.constant 0 : i32
    return %c0_i32, %c0_i32_0, %c0_i32_1 : i32, i32, i32
  }
  func.func @transform_7(%arg0: i32) -> (i32, i32, i32) {
    %c0_i32 = arith.constant 0 : i32
    %c0_i32_0 = arith.constant 0 : i32
    %c0_i32_1 = arith.constant 0 : i32
    %c0_i32_2 = arith.constant 0 : i32
    return %c0_i32, %c0_i32_0, %c0_i32_1 : i32, i32, i32
  }
  func.func @transform_8(%arg0: i32) -> (i32, i32, i32) {
    %c0_i32 = arith.constant 0 : i32
    %c0_i32_0 = arith.constant 0 : i32
    %c0_i32_1 = arith.constant 0 : i32
    %c0_i32_2 = arith.constant 0 : i32
    return %c0_i32, %c0_i32_0, %c0_i32_1 : i32, i32, i32
  }
  func.func @transform_9(%arg0: i32) -> (i32, i32, i32) {
    %c0_i32 = arith.constant 0 : i32
    %c0_i32_0 = arith.constant 0 : i32
    %c0_i32_1 = arith.constant 0 : i32
    %c0_i32_2 = arith.constant 0 : i32
    return %c0_i32, %c0_i32_0, %c0_i32_1 : i32, i32, i32
  }
  func.func @transform_10(%arg0: i32) -> (i32, i32, i32) {
    %c0_i32 = arith.constant 0 : i32
    %c0_i32_0 = arith.constant 0 : i32
    %c0_i32_1 = arith.constant 0 : i32
    %c0_i32_2 = arith.constant 0 : i32
    return %c0_i32, %c0_i32_0, %c0_i32_1 : i32, i32, i32
  }
  func.func @transform_11(%arg0: i32) -> (i32, i32) {
    %c0_i32 = arith.constant 0 : i32
    %c0_i32_0 = arith.constant 0 : i32
    %c0_i32_1 = arith.constant 0 : i32
    return %c0_i32, %c0_i32_0 : i32, i32
  }
  func.func @transform_12(%arg0: i32) -> (i32, i32) {
    %c0_i32 = arith.constant 0 : i32
    %c0_i32_0 = arith.constant 0 : i32
    %c0_i32_1 = arith.constant 0 : i32
    return %c0_i32, %c0_i32_0 : i32, i32
  }
  func.func @transform_13(%arg0: i32) -> (i32, i32) {
    %c0_i32 = arith.constant 0 : i32
    %c0_i32_0 = arith.constant 0 : i32
    %c0_i32_1 = arith.constant 0 : i32
    return %c0_i32, %c0_i32_0 : i32, i32
  }
  func.func @transform_14(%arg0: i32) -> (i32, i32) {
    %c0_i32 = arith.constant 0 : i32
    %c0_i32_0 = arith.constant 0 : i32
    return %arg0, %c0_i32 : i32, i32
  }
  func.func @transform_15(%arg0: i32) -> (i32, i32, i32) {
    %c0_i32 = arith.constant 0 : i32
    %c0_i32_0 = arith.constant 0 : i32
    %c0_i32_1 = arith.constant 0 : i32
    return %arg0, %c0_i32, %c0_i32_0 : i32, i32, i32
  }
}

</mosaic_0001>

<bundles_post_ra>
// kernel: tpu_custom_call.1
= control target key start
LH: loop header
LB: loop body
LE: loop exit
PB: predicated region body
PF: predicated region fallthrough
CT: control target
= control target key end

     0   :  { %21 = vsyncpa [#allocation3], 0  ;;  %s2718_s0 = inlined_call_operand.hbm [shape: f32[8,24], index: 0, kind: input, shape index: {}]   ;;  %s2719_s1 = inlined_call_operand.vmem [shape: f32[8,8,16], index: 1, kind: input, shape index: {}]   ;;  %s2720_s2 = inlined_call_operand.vmem [shape: f32[8,8,8], index: 2, kind: input, shape index: {}]   ;;  %s2721_s3 = inlined_call_operand.vmem [shape: f32[8,8,8], index: 3, kind: input, shape index: {}]   ;;  %s2722_s4 = inlined_call_operand.hbm [shape: f32[8,8], index: 4, kind: input, shape index: {}]   ;;  %s2723_s5 = inlined_call_operand.vmem [shape: f32[2,24,16], index: 5, kind: input, shape index: {}]   ;;  %s2724_s6 = inlined_call_operand.vmem [shape: f32[2,24,8], index: 6, kind: input, shape index: {}]   ;;  %s2725_s7 = inlined_call_operand.vmem [shape: f32[2,24,8], index: 7, kind: input, shape index: {}]   ;;  %s2726_s8 = inlined_call_operand.hbm [shape: f32[2,16,24], index: 8, kind: input, shape index: {}]   ;;  %s2727_s9 = inlined_call_operand.hbm [shape: f32[2,8,24], index: 9, kind: input, shape index: {}]   ;;  %s2728_s10 = inlined_call_operand.hbm [shape: f32[2,8,24], index: 10, kind: input, shape index: {}]   ;;  %s2729_s11 = inlined_call_operand.vmem [shape: f32[1,24], index: 11, kind: input, shape index: {}]   ;;  %s2730_s12 = inlined_call_operand.vmem [shape: f32[1,24], index: 12, kind: input, shape index: {}]   ;;  %s2731_s13 = inlined_call_operand.vmem [shape: f32[1,24], index: 13, kind: input, shape index: {}]   ;;  %s2732_s14 = inlined_call_operand.hbm [shape: f32[8,24], index: 14, kind: output, shape index: {0}]   ;;  %s2733_s15 = inlined_call_operand.hbm [shape: f32[8,2,8], index: 15, kind: output, shape index: {1}]  }
   0x1   :  { %22 = vsyncpa [#allocation6], 0 }
   0x2   :  { %23 = vsyncpa [#allocation9], 0 }
   0x3   :  { %24 = vsyncpa [#allocation4], 0  ;;  %s48_s20 = sshll.u32 %s2722_s4, 4  ;;  %s49_s20 = int_to_ptr.hbm [resolvable:$true] %s48_s20 }
   0x4   :  { %25 = vsyncpa [#allocation13], 0  ;;  %s1910_s21 = smov [#allocation5]   ;;  %s77_s25 = sshll.u32 %s2727_s9, 4  ;;  %s78_s25 = int_to_ptr.hbm [resolvable:$true] %s77_s25 }
   0x5   :  { %s50_s22 = sshll.u32 %s1910_s21, 4  ;;  %s1911_s26 = smov [#allocation8]   ;;  %s51_s22 = int_to_ptr.vmem [resolvable:$true] %s50_s22 }
   0x6   :  { %53 = dma.hbm_to_vmem [thread:$0]  %s49_s20, 128, %s51_s22, [#allocation6]  }
   0x7   :  { %s79_s27 = sshll.u32 %s1911_s26, 4  ;;  %s31_s30 = sshll.u32 %s2718_s0, 4  ;;  %s80_s27 = int_to_ptr.vmem [resolvable:$true] %s79_s27  ;;  %s32_s30 = int_to_ptr.hbm [resolvable:$true] %s31_s30 }
   0x8   :  { %s1912_s4 = smov 128   ;;  %s1913_s16 = smov 8  }
   0x9   :  { %85 = dma.hbm_to_vmem [thread:$0]  %s78_s25, 256, %s80_s27, [#allocation9], %s1912_s4, %s1912_s4, %s1913_s16  }
   0xa   :  { %s64_s19 = sshll.u32 %s2726_s8, 4  ;;  %s1914_s20 = smov [#allocation2]   ;;  %s65_s19 = int_to_ptr.hbm [resolvable:$true] %s64_s19 }
   0xb   :  { %s33_s21 = sshll.u32 %s1914_s20, 4  ;;  %s1915_s9 = smov [#allocation7]   ;;  %s34_s21 = int_to_ptr.vmem [resolvable:$true] %s33_s21 }
   0xc   :  { %36 = dma.hbm_to_vmem [thread:$0]  %s32_s30, 128, %s34_s21, [#allocation3]  }
   0xd   :  { %s66_s22 = sshll.u32 %s1915_s9, 4  ;;  %s90_s0 = sshll.u32 %s2728_s10, 4  ;;  %s67_s22 = int_to_ptr.vmem [resolvable:$true] %s66_s22  ;;  %s91_s0 = int_to_ptr.hbm [resolvable:$true] %s90_s0 }
   0xe   :  { %72 = dma.hbm_to_vmem [thread:$0]  %s65_s19, 512, %s67_s22, [#allocation6], %s1912_s4, %s1912_s4, %s1913_s16  }
   0xf   :  { %s1916_s26 = smov [#allocation10]  }
  0x10   :  { %s92_s25 = sshll.u32 %s1916_s26, 4  ;;  %s93_s25 = int_to_ptr.vmem [resolvable:$true] %s92_s25 }
  0x11   :  { %98 = dma.hbm_to_vmem [thread:$0]  %s91_s0, 256, %s93_s25, [#allocation9], %s1912_s4, %s1912_s4, %s1913_s16  }
  0x12   :  { %1900 = dma.done.wait [#allocation3], 128  }
  0x13   :  { %1901 = vsyncadd [#allocation3], 4294967168 }
  0x14   :  { %1902 = dma.done.wait [#allocation6], 640  }
  0x15   :  { %1903 = vsyncadd [#allocation6], 4294966656 }
  0x16   :  { %1904 = dma.done.wait [#allocation9], 512  }
  0x17   :  { %1905 = vsyncadd [#allocation9], 4294966784  ;;  %v154_v0 = vld [vmem:[%s2723_s5 + $0x10] sm:$0xff]  ;;  %v153_v2 = vld [vmem:[%s2723_s5 + $0x8] sm:$0xff]  ;;  %vm155_vm0 = vcmask 195584   ;;  %vm291_vm1 = vcmask 64512  }
  0x18   :  { %v238_v1 = vld [vmem:[%s2724_s6 + $0x10] sm:$0xff]  ;;  %172 = vmatpush.msra.mxu0 %v154_v0  ;;  %v237_v3 = vld [vmem:[%s2724_s6 + $0x8] sm:$0xff]  ;;  %v152_v4 = vld [vmem:[%s2723_s5] sm:$0xff]  ;;  %vm211_vm2 = vcmask 130048   ;;  %vm429_vm3 = vcmask 1041409   ;;  %vm431_vm4 = vcmask 1042434  }
  0x19   :  { %252 = vmatpush.msra.mxu1 %v238_v1  ;;  %v236_v5 = vld [vmem:[%s2724_s6] sm:$0xff]  ;;  %v1658_v6 = vld [vmem:[%s2723_s5 + $0x28] sm:$0xff]  ;;  %v326_v8 = vld [vmem:[%s2725_s7 + $0x10] sm:$0xff]  ;;  %vm433_vm5 = vcmask 1043459   ;;  %vm435_vm6 = vcmask 1044484   ;;  %vm437_vm7 = vcmask 1045509  }
  0x1a   :  { %173 = vmatpush.msra.mxu0 %v153_v2  ;;  %v125_v7 = vld [vmem:[#allocation2] sm:$0xff]  ;;  %473 = vmatpush.msra.mxu3 %v1658_v6  ;;  %v325_v10 = vld [vmem:[%s2725_s7 + $0x8] sm:$0xff]  ;;  %v1656_v11 = vld [vmem:[%s2723_s5 + $0x18] sm:$0xff]  ;;  %vm439_vm8 = vcmask 1046534   ;;  %vm441_vm9 = vcmask 1047559   ;;  %vm828_vm13 = vcmask 58368  }
  0x1b   :  { %253 = vmatpush.msra.mxu1 %v237_v3  ;;  %v1657_v9 = vld [vmem:[%s2723_s5 + $0x20] sm:$0xff]  ;;  %340 = vmatpush.msra.mxu2 %v326_v8  ;;  %v1662_v12 = vld [vmem:[%s2724_s6 + $0x28] sm:$0xff]  ;;  %v1660_v17 = vld [vmem:[%s2724_s6 + $0x18] sm:$0xff]  ;;  %s1633_s25 = sshll.u32 %s2733_s15, 4  ;;  %s1920_s8 = smov 32   ;;  %s1634_s25 = int_to_ptr.hbm [resolvable:$true] %s1633_s25 }
  0x1c   :  { %174 = vmatpush.msra.mxu0 %v152_v4  ;;  %v1666_v13 = vld [vmem:[%s2725_s7 + $0x28] sm:$0xff]  ;;  %v324_v14 = vld [vmem:[%s2725_s7] sm:$0xff]  ;;  %474 = vmatpush.msra.mxu3 %v1657_v9  ;;  %v1664_v18 = vld [vmem:[%s2725_s7 + $0x18] sm:$0xff]  ;;  %s1921_s27 = smov 2   ;;  %s1922_s30 = smov [#allocation11]  }
  0x1d   :  { %254 = vmatpush.msra.mxu1 %v236_v5  ;;  %1653 = vmatmul.msk.f32.vlgmr.msra.gmra.mxu0 %vm155_vm0, %v125_v7  ;;  %v1661_v15 = vld [vmem:[%s2724_s6 + $0x20] sm:$0xff]  ;;  %v2097_v27 = vld [vmem:[%s2719_s1 + $0x10] sm:$0xff]  ;;  %v2108_v38 = vld [vmem:[%s2720_s2 + $0x8] sm:$0xff]  ;;  %s1621_s4 = sshll.u32 %s1922_s30, 4  ;;  %s1623_s17 = sshll.u32 %s2732_s14, 4  ;;  %s1622_s4 = int_to_ptr.vmem [resolvable:$true] %s1621_s4  ;;  %s1624_s17 = int_to_ptr.hbm [resolvable:$true] %s1623_s17 }
  0x1e   :  { %1654 = vmatmul.msk.f32.vlgmr.msra.gmra.mxu1 %vm155_vm0, %v125_v7  ;;  %341 = vmatpush.msra.mxu2 %v325_v10  ;;  %v1665_v16 = vld [vmem:[%s2725_s7 + $0x20] sm:$0xff]  ;;  %v2113_v39 = vld [vmem:[%s2719_s1 + $0x8] sm:$0xff]  ;;  %v2119_v42 = vld [vmem:[%s2720_s2 + $0x10] sm:$0xff] }
  0x1f   :  { %553 = vmatpush.msrb.mxu0 %v1662_v12  ;;  %641 = vmatpush.msrb.mxu1 %v1666_v13  ;;  %v2085_v21 = vld [vmem:[%s2720_s2] sm:$0xff]  ;;  %v2132_v53 = vld [vmem:[%s2720_s2 + $0x18] sm:$0xff]  ;;  %v2167_v10 = vld [vmem:[%s2720_s2 + $0x28] sm:$0xff] }
  0x20   :  { %475 = vmatpush.msra.mxu3 %v1656_v11  ;;  %342 = vmatpush.msra.mxu2 %v324_v14  ;;  %v126_v22 = vld [vmem:[%s2719_s1] sm:$0xff]  ;;  %v2137_v54 = vld [vmem:[%s2719_s1 + $0x18] sm:$0xff] }
  0x21   :  { %1659 = vmatmul.msk.f32.vlgmr.msra.gmra.mxu3 %vm155_vm0, %v125_v7  ;;  %1655 = vmatmul.msk.f32.vlgmr.msra.gmra.mxu2 %vm155_vm0, %v125_v7  ;;  %v2145_v58 = vld [vmem:[%s2720_s2 + $0x20] sm:$0xff] }
  0x22   :  { %554 = vmatpush.msrb.mxu0 %v1661_v15  ;;  %642 = vmatpush.msrb.mxu1 %v1665_v16  ;;  %v2160_v5 = vld [vmem:[%s2719_s1 + $0x20] sm:$0xff] }
  0x24   :  { %555 = vmatpush.msrb.mxu0 %v1660_v17  ;;  %643 = vmatpush.msrb.mxu1 %v1664_v18  ;;  %v2177_v17 = vld [vmem:[%s2721_s3 + $0x8] sm:$0xff] }
  0x25   :  { %1663 = vmatmul.msk.f32.vlgmr.msrb.gmra.mxu0 %vm155_vm0, %v125_v7 }
  0x26   :  { %1667 = vmatmul.msk.f32.vlgmr.msrb.gmra.mxu1 %vm155_vm0, %v125_v7 }
  0x9a   :  { %v2078_v19 = vpop.f32.mrf.mxu0 }
  0x9b   :  { %v2080_v20 = vpop.f32.mrf.mxu1  ;;  %v187_v24 = vperm.slane %v2078_v19, 0  ;;  %v181_v25 = vrot.slane %v2078_v19, 2  ;;  %v180_v28 = vrot.slane %v2078_v19, 1  ;;  %v182_v46 = vrot.slane %v2078_v19, 3 }
  0x9c   :  { %v267_v23 = vperm.slane %v2080_v20, 0  ;;  %v260_v26 = vrot.slane %v2080_v20, 1  ;;  %v261_v32 = vrot.slane %v2080_v20, 2  ;;  %v262_v45 = vrot.slane %v2080_v20, 3 }
  0x9d   :  { %v203_v30 = vmul.f32 %v187_v24, %v126_v22  ;;  %v189_v31 = vperm.slane %v181_v25, 0  ;;  %v188_v37 = vperm.slane %v180_v28, 0  ;;  %v263_v48 = vrot.slane %v2080_v20, 4  ;;  %v2190_v28 = vld [vmem:[%s2720_s2 + $0x30] sm:$0xff] }
  0x9e   :  { %v283_v29 = vmul.f32 %v267_v23, %v2085_v21  ;;  %v268_v33 = vperm.slane %v260_v26, 0  ;;  %v269_v41 = vperm.slane %v261_v32, 0  ;;  %v270_v51 = vperm.slane %v262_v45, 0  ;;  %v2183_v23 = vld [vmem:[%s2719_s1 + $0x28] sm:$0xff] }
  0x9f   :  { %v212_v35 = vsel %vm211_vm2, %v203_v30, 0.0  ;;  %v205_v36 = vmul.f32 %v189_v31, %v2097_v27  ;;  %v204_v44 = vmul.f32 %v188_v37, %v2113_v39  ;;  %v190_v52 = vperm.slane %v182_v46, 0 }
  0xa0   :  { %v292_v34 = vsel %vm291_vm1, %v283_v29, 0.0  ;;  %213 = vadd.xlane.f32.xlu0 %v212_v35  ;;  %v284_v43 = vmul.f32 %v268_v33, %v2108_v38  ;;  %v285_v47 = vmul.f32 %v269_v41, %v2119_v42  ;;  %v271_v56 = vperm.slane %v263_v48, 0  ;;  %v2207_v41 = vld [vmem:[%s2721_s3 + $0x10] sm:$0xff] }
  0xa1   :  { %293 = vadd.xlane.f32.xlu1 %v292_v34  ;;  %v218_v40 = vsel %vm211_vm2, %v205_v36, 0.0  ;;  %v215_v50 = vsel %vm211_vm2, %v204_v44, 0.0  ;;  %v286_v59 = vmul.f32 %v270_v51, %v2132_v53  ;;  %v206_v60 = vmul.f32 %v190_v52, %v2137_v54 }
  0xa2   :  { %219 = vadd.xlane.f32.xlu2 %v218_v40  ;;  %v295_v49 = vsel %vm291_vm1, %v284_v43, 0.0  ;;  %v298_v55 = vsel %vm291_vm1, %v285_v47, 0.0  ;;  %v183_v61 = vrot.slane %v2078_v19, 4  ;;  %v287_v62 = vmul.f32 %v271_v56, %v2145_v58  ;;  %v2202_v40 = vld [vmem:[%s2719_s1 + $0x30] sm:$0xff]  ;;  %v2225_v56 = vld [vmem:[%s2719_s1 + $0x38] sm:$0xff] }
  0xa3   :  { %v264_v0 = vrot.slane %v2080_v20, 5  ;;  %v301_v2 = vsel %vm291_vm1, %v286_v59, 0.0  ;;  %v221_v3 = vsel %vm211_vm2, %v206_v60, 0.0  ;;  %v184_v12 = vrot.slane %v2078_v19, 5 }
  0xa4   :  { %v2140_v57 = vpop.f32.mrf.mxu3  ;;  %v2153_v1 = vpop.f32.mrf.mxu2  ;;  %v191_v4 = vperm.slane %v183_v61, 0  ;;  %v304_v6 = vsel %vm291_vm1, %v287_v62, 0.0  ;;  %v265_v16 = vrot.slane %v2080_v20, 6  ;;  %v185_v30 = vrot.slane %v2078_v19, 6  ;;  %v2237_v61 = vld [vmem:[%s2721_s3] sm:$0xff] }
  0xa5   :  { %v488_v63 = vperm.slane %v2140_v57, 0  ;;  %v272_v8 = vperm.slane %v264_v0, 0  ;;  %v348_v9 = vrot.slane %v2153_v1, 1  ;;  %v349_v31 = vrot.slane %v2153_v1, 2 }
  0xa6   :  { %v207_v11 = vmul.f32 %v191_v4, %v2160_v5  ;;  %v273_v26 = vperm.slane %v265_v16, 0  ;;  %v266_v34 = vrot.slane %v2080_v20, 7  ;;  %v193_v36 = vperm.slane %v185_v30, 0  ;;  %v2213_v20 = vld [vmem:[%s2720_s2 + $0x38] sm:$0xff] }
  0xa7   :  { %v504_v7 = vmul.f32 %v488_v63, %v126_v22  ;;  %v288_v14 = vmul.f32 %v272_v8, %v2167_v10  ;;  %v356_v15 = vperm.slane %v348_v9, 0  ;;  %v192_v22 = vperm.slane %v184_v12, 0  ;;  %v2255_v12 = vld [vmem:[%s2721_s3 + $0x20] sm:$0xff] }
  0xa8   :  { %216 = vadd.xlane.f32.xlu0 %v215_v50  ;;  %v224_v18 = vsel %vm211_vm2, %v207_v11, 0.0  ;;  %v289_v33 = vmul.f32 %v273_v26, %v2190_v28  ;;  %v357_v37 = vperm.slane %v349_v31, 0  ;;  %v274_v44 = vperm.slane %v266_v34, 0  ;;  %v2250_v11 = vld [vmem:[%s2721_s3 + $0x30] sm:$0xff]  ;;  %v2276_v34 = vld [vmem:[%s2721_s3 + $0x28] sm:$0xff] }
  0xa9   :  { %296 = vadd.xlane.f32.xlu1 %v295_v49  ;;  %v512_v13 = vsel %vm211_vm2, %v504_v7, 0.0  ;;  %v307_v24 = vsel %vm291_vm1, %v288_v14, 0.0  ;;  %v372_v25 = vmul.f32 %v356_v15, %v2177_v17  ;;  %v208_v29 = vmul.f32 %v192_v22, %v2183_v23  ;;  %v2261_v15 = vld [vmem:[%s2721_s3 + $0x38] sm:$0xff] }
  0xaa   :  { %299 = vadd.xlane.f32.xlu2 %v298_v55  ;;  %v310_v43 = vsel %vm291_vm1, %v289_v33, 0.0  ;;  %v209_v45 = vmul.f32 %v193_v36, %v2202_v40  ;;  %v373_v46 = vmul.f32 %v357_v37, %v2207_v41  ;;  %v186_v47 = vrot.slane %v2078_v19, 7  ;;  %v2230_v19 = vld [vmem:[%s2721_s3 + $0x18] sm:$0xff] }
  0xab   :  { %v382_v32 = vsel %vm291_vm1, %v372_v25, 0.0  ;;  %v227_v35 = vsel %vm211_vm2, %v208_v29, 0.0  ;;  %v350_v48 = vrot.slane %v2153_v1, 3  ;;  %v290_v49 = vmul.f32 %v274_v44, %v2213_v20  ;;  %v2267_v25 = vpop.f32.mrf.mxu0 }
  0xac   :  { %v230_v50 = vsel %vm211_vm2, %v209_v45, 0.0  ;;  %v385_v51 = vsel %vm291_vm1, %v373_v46, 0.0  ;;  %v194_v52 = vperm.slane %v186_v47, 0  ;;  %v355_v60 = vperm.slane %v2153_v1, 0  ;;  %v2284_v45 = vpop.f32.mrf.mxu1 }
  0xad   :  { %v358_v55 = vperm.slane %v350_v48, 0  ;;  %v313_v59 = vsel %vm291_vm1, %v290_v49, 0.0  ;;  %v353_v0 = vrot.slane %v2153_v1, 6  ;;  %v354_v4 = vrot.slane %v2153_v1, 7 }
  0xae   :  { %v210_v62 = vmul.f32 %v194_v52, %v2225_v56  ;;  %v481_v16 = vrot.slane %v2140_v57, 1  ;;  %v568_v33 = vperm.slane %v2267_v25, 0  ;;  %v482_v36 = vrot.slane %v2140_v57, 2 }
  0xaf   :  { %v374_v63 = vmul.f32 %v358_v55, %v2230_v19  ;;  %v361_v8 = vperm.slane %v353_v0, 0  ;;  %v362_v14 = vperm.slane %v354_v4, 0  ;;  %v483_v44 = vrot.slane %v2140_v57, 3 }
  0xb0   :  { %222 = vadd.xlane.f32.xlu0 %v221_v3  ;;  %v371_v3 = vmul.f32 %v355_v60, %v2237_v61  ;;  %v489_v29 = vperm.slane %v481_v16, 0  ;;  %v490_v47 = vperm.slane %v482_v36, 0  ;;  %v484_v52 = vrot.slane %v2140_v57, 4 }
  0xb1   :  { %302 = vadd.xlane.f32.xlu1 %v301_v2  ;;  %v351_v2 = vrot.slane %v2153_v1, 4  ;;  %v388_v7 = vsel %vm291_vm1, %v374_v63, 0.0  ;;  %v378_v26 = vmul.f32 %v362_v14, %v2261_v15  ;;  %v561_v60 = vrot.slane %v2267_v25, 1 }
  0xb2   :  { %305 = vadd.xlane.f32.xlu2 %v304_v6  ;;  %v233_v6 = vsel %vm211_vm2, %v210_v62, 0.0  ;;  %v562_v62 = vrot.slane %v2267_v25, 2  ;;  %v492_v63 = vperm.slane %v484_v52, 0  ;;  %v564_v14 = vrot.slane %v2267_v25, 4 }
  0xb3   :  { %v359_v9 = vperm.slane %v351_v2, 0  ;;  %v569_v4 = vperm.slane %v561_v60, 0  ;;  %v563_v60 = vrot.slane %v2267_v25, 3 }
  0xb5   :  { %v375_v22 = vmul.f32 %v359_v9, %v2255_v12  ;;  %v649_v9 = vrot.slane %v2284_v45, 1 }
  0xb7   :  { %v391_v31 = vsel %vm291_vm1, %v375_v22, 0.0 }
  0xb8   :  { %513 = vadd.xlane.f32.xlu0 %v512_v13  ;;  %v379_v13 = vsel %vm291_vm1, %v371_v3, 0.0 }
  0xb9   :  { %225 = vadd.xlane.f32.xlu1 %v224_v18  ;;  %v377_v18 = vmul.f32 %v361_v8, %v2250_v11  ;;  %v485_v8 = vrot.slane %v2140_v57, 5 }
  0xba   :  { %308 = vadd.xlane.f32.xlu2 %v307_v24  ;;  %v352_v24 = vrot.slane %v2153_v1, 5  ;;  %v400_v1 = vsel %vm291_vm1, %v378_v26, 0.0  ;;  %v572_v26 = vperm.slane %v564_v14, 0  ;;  %v655_v14 = vrot.slane %v2284_v45, 7 }
  0xbb   :  { %v397_v30 = vsel %vm291_vm1, %v377_v18, 0.0  ;;  %v493_v22 = vperm.slane %v485_v8, 0 }
  0xc0   :  { %383 = vadd.xlane.f32.xlu0 %v382_v32  ;;  %v360_v32 = vperm.slane %v352_v24, 0  ;;  %v657_v24 = vperm.slane %v649_v9, 0 }
  0xc1   :  { %228 = vadd.xlane.f32.xlu1 %v227_v35  ;;  %v505_v35 = vmul.f32 %v489_v29, %v2113_v39  ;;  %v509_v29 = vmul.f32 %v493_v22, %v2183_v23 }
  0xc2   :  { %311 = vadd.xlane.f32.xlu2 %v310_v43  ;;  %v376_v37 = vmul.f32 %v360_v32, %v2276_v34  ;;  %v584_v43 = vmul.f32 %v568_v33, %v2085_v21  ;;  %v506_v21 = vmul.f32 %v490_v47, %v2097_v27  ;;  %v508_v27 = vmul.f32 %v492_v63, %v2160_v5 }
  0xc3   :  { %v515_v46 = vsel %vm211_vm2, %v505_v35, 0.0  ;;  %v588_v32 = vmul.f32 %v572_v26, %v2145_v58  ;;  %v565_v33 = vrot.slane %v2267_v25, 5  ;;  %v487_v58 = vrot.slane %v2140_v57, 7 }
  0xc4   :  { %v394_v48 = vsel %vm291_vm1, %v376_v37, 0.0  ;;  %v592_v49 = vsel %vm291_vm1, %v584_v43, 0.0  ;;  %v518_v0 = vsel %vm211_vm2, %v506_v21, 0.0  ;;  %v524_v16 = vsel %vm211_vm2, %v508_v27, 0.0 }
  0xc5   :  { %v604_v43 = vsel %vm291_vm1, %v588_v32, 0.0  ;;  %v495_v21 = vperm.slane %v487_v58, 0  ;;  %v663_v26 = vperm.slane %v655_v14, 0 }
  0xc8   :  { %386 = vadd.xlane.f32.xlu0 %v385_v51  ;;  %v656_v51 = vperm.slane %v2284_v45, 0 }
  0xc9   :  { %231 = vadd.xlane.f32.xlu1 %v230_v50  ;;  %v491_v50 = vperm.slane %v483_v44, 0  ;;  %v573_v44 = vperm.slane %v565_v33, 0 }
  0xca   :  { %314 = vadd.xlane.f32.xlu2 %v313_v59  ;;  %v672_v59 = vmul.f32 %v656_v51, %v2237_v61 }
  0xcb   :  { %v507_v55 = vmul.f32 %v491_v50, %v2137_v54  ;;  %v566_v50 = vrot.slane %v2267_v25, 6 }
  0xcc   :  { %v680_v3 = vsel %vm291_vm1, %v672_v59, 0.0 }
  0xcd   :  { %v521_v2 = vsel %vm211_vm2, %v507_v55, 0.0  ;;  %v574_v59 = vperm.slane %v566_v50, 0 }
  0xcf   :  { %v590_v63 = vmul.f32 %v574_v59, %v2190_v28  ;;  %v654_v28 = vrot.slane %v2284_v45, 6 }
  0xd0   :  { %389 = vadd.xlane.f32.xlu0 %v388_v7  ;;  %v585_v7 = vmul.f32 %v569_v4, %v2108_v38  ;;  %v571_v4 = vperm.slane %v563_v60, 0 }
  0xd1   :  { %234 = vadd.xlane.f32.xlu1 %v233_v6  ;;  %v570_v6 = vperm.slane %v562_v62, 0  ;;  %v652_v62 = vrot.slane %v2284_v45, 4  ;;  %v610_v27 = vsel %vm291_vm1, %v590_v63, 0.0  ;;  %v662_v22 = vperm.slane %v654_v28, 0 }
  0xd2   :  { %380 = vadd.xlane.f32.xlu2 %v379_v13  ;;  %v595_v18 = vsel %vm291_vm1, %v585_v7, 0.0  ;;  %v587_v8 = vmul.f32 %v571_v4, %v2132_v53 }
  0xd3   :  { %v586_v13 = vmul.f32 %v570_v6, %v2119_v42  ;;  %v486_v42 = vrot.slane %v2140_v57, 6  ;;  %v511_v57 = vmul.f32 %v495_v21, %v2225_v56  ;;  %v660_v6 = vperm.slane %v652_v62, 0 }
  0xd5   :  { %v598_v5 = vsel %vm291_vm1, %v586_v13, 0.0  ;;  %v494_v36 = vperm.slane %v486_v42, 0  ;;  %v676_v9 = vmul.f32 %v660_v6, %v2255_v12 }
  0xd8   :  { %392 = vadd.xlane.f32.xlu0 %v391_v31  ;;  %v650_v31 = vrot.slane %v2284_v45, 2 }
  0xd9   :  { %398 = vadd.xlane.f32.xlu1 %v397_v30  ;;  %v673_v30 = vmul.f32 %v657_v24, %v2177_v17 }
  0xda   :  { %401 = vadd.xlane.f32.xlu2 %v400_v1  ;;  %v527_v1 = vsel %vm211_vm2, %v509_v29, 0.0  ;;  %v658_v37 = vperm.slane %v650_v31, 0 }
  0xdb   :  { %v683_v35 = vsel %vm291_vm1, %v673_v30, 0.0  ;;  %v678_v30 = vmul.f32 %v662_v22, %v2250_v11 }
  0xdc   :  { %v674_v47 = vmul.f32 %v658_v37, %v2207_v41 }
  0xdd   :  { %v698_v32 = vsel %vm291_vm1, %v678_v30, 0.0 }
  0xde   :  { %v686_v52 = vsel %vm291_vm1, %v674_v47, 0.0 }
  0xe0   :  { %395 = vadd.xlane.f32.xlu0 %v394_v48  ;;  %v651_v48 = vrot.slane %v2284_v45, 3 }
  0xe1   :  { %516 = vadd.xlane.f32.xlu1 %v515_v46  ;;  %v510_v46 = vmul.f32 %v494_v36, %v2202_v40 }
  0xe2   :  { %593 = vadd.xlane.f32.xlu2 %v592_v49  ;;  %v589_v49 = vmul.f32 %v573_v44, %v2167_v10  ;;  %v659_v55 = vperm.slane %v651_v48, 0 }
  0xe3   :  { %v530_v51 = vsel %vm211_vm2, %v510_v46, 0.0 }
  0xe4   :  { %v607_v40 = vsel %vm291_vm1, %v589_v49, 0.0  ;;  %v675_v41 = vmul.f32 %v659_v55, %v2230_v19 }
  0xe8   :  { %522 = vadd.xlane.f32.xlu0 %v521_v2  ;;  %v533_v2 = vsel %vm211_vm2, %v511_v57, 0.0 }
  0xe9   :  { %519 = vadd.xlane.f32.xlu1 %v518_v0  ;;  %v567_v0 = vrot.slane %v2267_v25, 7  ;;  %v653_v25 = vrot.slane %v2284_v45, 5  ;;  %v679_v45 = vmul.f32 %v663_v26, %v2261_v15 }
  0xea   :  { %681 = vadd.xlane.f32.xlu2 %v680_v3  ;;  %v689_v3 = vsel %vm291_vm1, %v675_v41, 0.0  ;;  %v419_v41 = vlaneseq }
  0xeb   :  { %v575_v7 = vperm.slane %v567_v0, 0  ;;  %v661_v24 = vperm.slane %v653_v25, 0 }
  0xec   :  { %v2353_v63 = vand.u32 127, %v419_v41 }
  0xed   :  { %v591_v13 = vmul.f32 %v575_v7, %v2213_v20  ;;  %v677_v42 = vmul.f32 %v661_v24, %v2276_v34 }
  0xef   :  { %v695_v33 = vsel %vm291_vm1, %v677_v42, 0.0 }
  0xf0   :  { %596 = vadd.xlane.f32.xlu0 %v595_v18  ;;  %v692_v18 = vsel %vm291_vm1, %v676_v9, 0.0 }
  0xf1   :  { %525 = vadd.xlane.f32.xlu1 %v524_v16  ;;  %v601_v16 = vsel %vm291_vm1, %v587_v8, 0.0 }
  0xf2   :  { %599 = vadd.xlane.f32.xlu2 %v598_v5  ;;  %v613_v5 = vsel %vm291_vm1, %v591_v13, 0.0 }
  0xf8   :  { %684 = vadd.xlane.f32.xlu0 %v683_v35 }
  0xf9   :  { %528 = vadd.xlane.f32.xlu1 %v527_v1  ;;  %v701_v1 = vsel %vm291_vm1, %v679_v45, 0.0 }
  0xfa   :  { %605 = vadd.xlane.f32.xlu2 %v604_v43 }
 0x100   :  { %687 = vadd.xlane.f32.xlu0 %v686_v52 }
 0x101   :  { %531 = vadd.xlane.f32.xlu1 %v530_v51 }
 0x102   :  { %608 = vadd.xlane.f32.xlu2 %v607_v40 }
 0x108   :  { %690 = vadd.xlane.f32.xlu0 %v689_v3 }
 0x109   :  { %534 = vadd.xlane.f32.xlu1 %v533_v2 }
 0x10a   :  { %611 = vadd.xlane.f32.xlu2 %v610_v27 }
 0x110   :  { %693 = vadd.xlane.f32.xlu0 %v692_v18 }
 0x111   :  { %602 = vadd.xlane.f32.xlu1 %v601_v16 }
 0x112   :  { %614 = vadd.xlane.f32.xlu2 %v613_v5 }
 0x113   :  { %v214_v29 = vpop.xlane.xlu0 %213 }
 0x114   :  { %v294_v12 = vpop.xlane.xlu1 %293 }
 0x115   :  { %v220_v31 = vpop.xlane.xlu2 %219  ;;  %v316_v57 = vadd.f32 %v294_v12, %v214_v29 }
 0x118   :  { %696 = vadd.xlane.f32.xlu0 %v695_v33  ;;  %v2362_v33 = vld [vmem:[#allocation5] sm:$0xff] }
 0x119   :  { %699 = vadd.xlane.f32.xlu1 %v698_v32  ;;  %vm151_vm10 = vcmp.eq.f32.partialorder %v2362_v33, 0.0  ;;  %v749_v33 = vshrl.u32 %v419_v41, 7 }
 0x11a   :  { %702 = vadd.xlane.f32.xlu2 %v701_v1 }
 0x11b   :  { %v217_v36 = vpop.xlane.xlu0 %216  ;;  %1691 = vset.pattern.permute.xlu0 %v749_v33  ;;  %1690 = vset.pattern.permute.xlu2 %v749_v33  ;;  %vm750_vm11 = vcmp.eq.s32.totalorder %v749_v33, 0  ;;  %vm785_vm12 = vcmp.eq.s32.totalorder %v749_v33, 1 }
 0x11c   :  { %v297_v35 = vpop.xlane.xlu1 %296  ;;  %1689 = vset.pattern.permute.xlu1 %v749_v33 }
 0x11d   :  { %v300_v37 = vpop.xlane.xlu2 %299  ;;  %v317_v60 = vadd.f32 %v297_v35, %v217_v36 }
 0x11e   :  { %v318_v2 = vadd.f32 %v300_v37, %v220_v31 }
 0x123   :  { %v223_v44 = vpop.xlane.xlu0 %222 }
 0x124   :  { %v303_v43 = vpop.xlane.xlu1 %302 }
 0x125   :  { %v306_v11 = vpop.xlane.xlu2 %305  ;;  %v319_v9 = vadd.f32 %v303_v43, %v223_v44 }
 0x12b   :  { %v2350_v47 = vpop.xlane.xlu0 %513 }
 0x12c   :  { %v226_v46 = vpop.xlane.xlu1 %225 }
 0x12d   :  { %v309_v58 = vpop.xlane.xlu2 %308  ;;  %v320_v27 = vadd.f32 %v306_v11, %v226_v46 }
 0x133   :  { %v384_v49 = vpop.xlane.xlu0 %383 }
 0x134   :  { %v229_v48 = vpop.xlane.xlu1 %228  ;;  %v404_v0 = vadd.f32 %v384_v49, %v317_v60 }
 0x135   :  { %v312_v50 = vpop.xlane.xlu2 %311  ;;  %v321_v22 = vadd.f32 %v309_v58, %v229_v48 }
 0x136   :  { %v422_v28 = vperm.slane %v404_v0, %v2353_v63 }
 0x13b   :  { %v387_v52 = vpop.xlane.xlu0 %386 }
 0x13c   :  { %v232_v51 = vpop.xlane.xlu1 %231  ;;  %v405_v7 = vadd.f32 %v387_v52, %v318_v2 }
 0x13d   :  { %v315_v21 = vpop.xlane.xlu2 %314  ;;  %v322_v16 = vadd.f32 %v312_v50, %v232_v51 }
 0x13e   :  { %v423_v18 = vperm.slane %v405_v7, %v2353_v63 }
 0x143   :  { %v390_v40 = vpop.xlane.xlu0 %389 }
 0x144   :  { %v235_v55 = vpop.xlane.xlu1 %234  ;;  %v406_v13 = vadd.f32 %v390_v40, %v319_v9 }
 0x145   :  { %v381_v59 = vpop.xlane.xlu2 %380  ;;  %v323_v24 = vadd.f32 %v315_v21, %v235_v55 }
 0x146   :  { %v403_v62 = vadd.f32 %v381_v59, %v316_v57  ;;  %v424_v42 = vperm.slane %v406_v13, %v2353_v63 }
 0x148   :  { %v421_v6 = vperm.slane %v403_v62, %v2353_v63 }
 0x14a   :  { %v430_v14 = vsel %vm429_vm3, %v422_v28, %v421_v6 }
 0x14b   :  { %v393_v4 = vpop.xlane.xlu0 %392  ;;  %v432_v5 = vsel %vm431_vm4, %v423_v18, %v430_v14 }
 0x14c   :  { %v399_v3 = vpop.xlane.xlu1 %398  ;;  %v407_v25 = vadd.f32 %v393_v4, %v320_v27  ;;  %v434_v1 = vsel %vm433_vm5, %v424_v42, %v432_v5 }
 0x14d   :  { %v402_v8 = vpop.xlane.xlu2 %401  ;;  %v409_v26 = vadd.f32 %v399_v3, %v322_v16 }
 0x14e   :  { %v425_v12 = vperm.slane %v407_v25, %v2353_v63  ;;  %v410_v31 = vadd.f32 %v402_v8, %v323_v24 }
 0x14f   :  { %v427_v36 = vperm.slane %v409_v26, %v2353_v63 }
 0x150   :  { %v436_v37 = vsel %vm435_vm6, %v425_v12, %v434_v1  ;;  %v428_v43 = vperm.slane %v410_v31, %v2353_v63 }
 0x153   :  { %v396_v30 = vpop.xlane.xlu0 %395 }
 0x154   :  { %v517_v29 = vpop.xlane.xlu1 %516  ;;  %v408_v45 = vadd.f32 %v396_v30, %v321_v22 }
 0x155   :  { %v594_v32 = vpop.xlane.xlu2 %593 }
 0x156   :  { %v426_v35 = vperm.slane %v408_v45, %v2353_v63  ;;  %v616_v7 = vadd.f32 %v594_v32, %v2350_v47 }
 0x158   :  { %v438_v44 = vsel %vm437_vm7, %v426_v35, %v436_v37 }
 0x159   :  { %v440_v11 = vsel %vm439_vm8, %v427_v36, %v438_v44 }
 0x15a   :  { %v442_v46 = vsel %vm441_vm9, %v428_v43, %v440_v11 }
 0x15b   :  { %v523_v48 = vpop.xlane.xlu0 %522  ;;  %v444_v49 = vsel %vm151_vm10, -1e+10, %v442_v46 }
 0x15c   :  { %v520_v58 = vpop.xlane.xlu1 %519  ;;  %v445_v50 = vsel %vm291_vm1, %v444_v49, -inf }
 0x15d   :  { %v682_v51 = vpop.xlane.xlu2 %681  ;;  %446 = vmax.xlane.f32.xlu0 %v445_v50 }
 0x15e   :  { %v704_v13 = vadd.f32 %v682_v51, %v616_v7 }
 0x160   :  { %v720_v26 = vperm.slane %v704_v13, %v2353_v63 }
 0x163   :  { %v597_v21 = vpop.xlane.xlu0 %596 }
 0x164   :  { %v526_v52 = vpop.xlane.xlu1 %525  ;;  %v617_v6 = vadd.f32 %v597_v21, %v517_v29 }
 0x165   :  { %v600_v55 = vpop.xlane.xlu2 %599 }
 0x166   :  { %v618_v27 = vadd.f32 %v600_v55, %v520_v58 }
 0x16b   :  { %v685_v59 = vpop.xlane.xlu0 %684 }
 0x16c   :  { %v529_v40 = vpop.xlane.xlu1 %528  ;;  %v705_v8 = vadd.f32 %v685_v59, %v617_v6 }
 0x16d   :  { %v606_v57 = vpop.xlane.xlu2 %605 }
 0x16e   :  { %v721_v18 = vperm.slane %v705_v8, %v2353_v63  ;;  %v620_v24 = vadd.f32 %v606_v57, %v526_v52 }
 0x170   :  { %v728_v47 = vsel %vm429_vm3, %v721_v18, %v720_v26 }
 0x173   :  { %v688_v62 = vpop.xlane.xlu0 %687 }
 0x174   :  { %v532_v60 = vpop.xlane.xlu1 %531  ;;  %v706_v9 = vadd.f32 %v688_v62, %v618_v27 }
 0x175   :  { %v609_v0 = vpop.xlane.xlu2 %608 }
 0x176   :  { %v722_v5 = vperm.slane %v706_v9, %v2353_v63  ;;  %v621_v30 = vadd.f32 %v609_v0, %v529_v40 }
 0x178   :  { %v729_v31 = vsel %vm431_vm4, %v722_v5, %v728_v47  ;;  %v1917_v47 = vmov 0.0  }
 0x17b   :  { %v691_v3 = vpop.xlane.xlu0 %690 }
 0x17c   :  { %v535_v2 = vpop.xlane.xlu1 %534 }
 0x17d   :  { %v612_v4 = vpop.xlane.xlu2 %611 }
 0x17e   :  { %v622_v42 = vadd.f32 %v612_v4, %v532_v60 }
 0x183   :  { %v694_v25 = vpop.xlane.xlu0 %693 }
 0x184   :  { %v603_v28 = vpop.xlane.xlu1 %602  ;;  %v708_v29 = vadd.f32 %v694_v25, %v620_v24 }
 0x185   :  { %v619_v14 = vadd.f32 %v603_v28, %v523_v48  ;;  %v615_v16 = vpop.xlane.xlu2 %614 }
 0x186   :  { %v623_v35 = vadd.f32 %v615_v16, %v535_v2  ;;  %v724_v43 = vperm.slane %v708_v29, %v2353_v63 }
 0x187   :  { %v707_v22 = vadd.f32 %v691_v3, %v619_v14 }
 0x189   :  { %v723_v12 = vperm.slane %v707_v22, %v2353_v63 }
 0x18b   :  { %v697_v32 = vpop.xlane.xlu0 %696  ;;  %v730_v1 = vsel %vm433_vm5, %v723_v12, %v729_v31 }
 0x18c   :  { %v700_v45 = vpop.xlane.xlu1 %699  ;;  %v709_v37 = vadd.f32 %v697_v32, %v621_v30  ;;  %v731_v48 = vsel %vm435_vm6, %v724_v43, %v730_v1  ;;  %v1668_v30 = vsel %vm750_vm11, 1.0, %v1917_v47 }
 0x18d   :  { %v710_v36 = vadd.f32 %v700_v45, %v622_v42  ;;  %v703_v44 = vpop.xlane.xlu2 %702 }
 0x18e   :  { %v725_v46 = vperm.slane %v709_v37, %v2353_v63  ;;  %v711_v58 = vadd.f32 %v703_v44, %v623_v35 }
 0x18f   :  { %v726_v11 = vperm.slane %v710_v36, %v2353_v63 }
 0x190   :  { %v727_v50 = vperm.slane %v711_v58, %v2353_v63  ;;  %v732_v51 = vsel %vm437_vm7, %v725_v46, %v731_v48 }
 0x191   :  { %v733_v52 = vsel %vm439_vm8, %v726_v11, %v732_v51  ;;  %v1669_v51 = vsel %vm785_vm12, 1.0, %v1917_v47 }
 0x192   :  { %v734_v21 = vsel %vm441_vm9, %v727_v50, %v733_v52 }
 0x193   :  { %v736_v55 = vsel %vm151_vm10, -1e+10, %v734_v21 }
 0x194   :  { %v737_v40 = vsel %vm291_vm1, %v736_v55, -inf }
 0x195   :  { %738 = vmax.xlane.f32.xlu1 %v737_v40 }
 0x1d0   :  { %v447_v59 = vpop.xlane.xlu0 %446 }
 0x1d1   :  { %v448_v57 = vsub.f32 %v444_v49, %v447_v59 }
 0x1d3   :  { %v449_v60 = vmul.f32 1.442695, %v448_v57 }
 0x1d5   :  { %1695 = vpow2.f32 %v449_v60 }
 0x1db   :  { %v1696_v62 = vpop.eup %1695 }
 0x1dc   :  { %v451_v0 = vsel %vm291_vm1, %v1696_v62, 0.0 }
 0x1dd   :  { %452 = vadd.xlane.f32.xlu2 %v451_v0 }
 0x208   :  { %v739_v63 = vpop.xlane.xlu1 %738 }
 0x209   :  { %v740_v2 = vsub.f32 %v736_v55, %v739_v63 }
 0x20b   :  { %v741_v3 = vmul.f32 1.442695, %v740_v2 }
 0x20d   :  { %1697 = vpow2.f32 %v741_v3 }
 0x213   :  { %v1698_v4 = vpop.eup %1697 }
 0x214   :  { %v743_v6 = vsel %vm291_vm1, %v1698_v4, 0.0 }
 0x215   :  { %744 = vadd.xlane.f32.xlu0 %v743_v6 }
 0x250   :  { %v453_v49 = vpop.xlane.xlu2 %452 }
 0x251   :  { %1699 = vrcp.f32 %v453_v49 }
 0x257   :  { %v1700_v27 = vpop.eup %1699 }
 0x258   :  { %v455_v7 = vmul.f32 %v1700_v27, %v1696_v62 }
 0x25a   :  { %v851_v8 = vperm.slane %v455_v7, 2  ;;  %v844_v9 = vperm.slane %v455_v7, 1  ;;  %v761_v28 = vperm.slane %v455_v7, 0  ;;  %v858_v25 = vperm.slane %v455_v7, 3 }
 0x25b   :  { %v865_v13 = vperm.slane %v455_v7, 4  ;;  %v872_v14 = vperm.slane %v455_v7, 5  ;;  %v879_v16 = vperm.slane %v455_v7, 6  ;;  %v886_v41 = vperm.slane %v455_v7, 7 }
 0x25c   :  { %856 = vperm.xlu0 %1691, %v851_v8   ;;  %849 = vperm.xlu2 %1690, %v844_v9   ;;  %v754_v18 = vrot.slane %v455_v7, 1  ;;  %v755_v22 = vrot.slane %v455_v7, 2  ;;  %v756_v5 = vrot.slane %v455_v7, 3  ;;  %v757_v26 = vrot.slane %v455_v7, 4 }
 0x25d   :  { %842 = vperm.xlu1 %1689, %v761_v28   ;;  %v758_v12 = vrot.slane %v455_v7, 5  ;;  %v759_v29 = vrot.slane %v455_v7, 6  ;;  %v760_v42 = vrot.slane %v455_v7, 7  ;;  %v777_v43 = vmul.f32 %v1668_v30, %v761_v28 }
 0x25e   :  { %v762_v31 = vperm.slane %v754_v18, 0  ;;  %v763_v45 = vperm.slane %v755_v22, 0  ;;  %v764_v32 = vperm.slane %v756_v5, 0  ;;  %v765_v1 = vperm.slane %v757_v26, 0 }
 0x25f   :  { %v766_v36 = vperm.slane %v758_v12, 0  ;;  %v767_v37 = vperm.slane %v759_v29, 0  ;;  %v768_v44 = vperm.slane %v760_v42, 0 }
 0x260   :  { %v778_v11 = vmul.f32 %v1668_v30, %v762_v31  ;;  %v779_v46 = vmul.f32 %v1668_v30, %v763_v45  ;;  %v780_v48 = vmul.f32 %v1668_v30, %v764_v32  ;;  %v781_v50 = vmul.f32 %v1668_v30, %v765_v1 }
 0x261   :  { %v784_v29 = vmul.f32 %v1668_v30, %v768_v44 }
 0x264   :  { %863 = vperm.xlu2 %1690, %v858_v25  }
 0x265   :  { %870 = vperm.xlu1 %1689, %v865_v13  }
 0x26c   :  { %877 = vperm.xlu2 %1690, %v872_v14  }
 0x26d   :  { %884 = vperm.xlu1 %1689, %v879_v16   ;;  %v782_v16 = vmul.f32 %v1668_v30, %v766_v36 }
 0x274   :  { %891 = vperm.xlu2 %1690, %v886_v41  }
 0x288   :  { %v745_v24 = vpop.xlane.xlu0 %744 }
 0x289   :  { %1701 = vrcp.f32 %v745_v24  ;;  %v783_v24 = vmul.f32 %v1668_v30, %v767_v37 }
 0x28f   :  { %v1702_v35 = vpop.eup %1701 }
 0x290   :  { %v747_v58 = vmul.f32 %v1702_v35, %v1698_v4 }
 0x292   :  { %v1215_v52 = vperm.slane %v747_v58, 2  ;;  %v1208_v21 = vperm.slane %v747_v58, 1  ;;  %v796_v55 = vperm.slane %v747_v58, 0  ;;  %v789_v40 = vrot.slane %v747_v58, 1 }
 0x293   :  { %v790_v59 = vrot.slane %v747_v58, 2  ;;  %v791_v57 = vrot.slane %v747_v58, 3  ;;  %v792_v60 = vrot.slane %v747_v58, 4  ;;  %v793_v62 = vrot.slane %v747_v58, 5 }
 0x294   :  { %1220 = vperm.xlu2 %1690, %v1215_v52   ;;  %1213 = vperm.xlu0 %1691, %v1208_v21   ;;  %v794_v0 = vrot.slane %v747_v58, 6  ;;  %v795_v63 = vrot.slane %v747_v58, 7  ;;  %v797_v2 = vperm.slane %v789_v40, 0  ;;  %v812_v3 = vmul.f32 %v1669_v51, %v796_v55 }
 0x295   :  { %1206 = vperm.xlu1 %1689, %v796_v55   ;;  %v798_v4 = vperm.slane %v790_v59, 0  ;;  %v799_v6 = vperm.slane %v791_v57, 0  ;;  %v800_v33 = vperm.slane %v792_v60, 0  ;;  %v801_v49 = vperm.slane %v793_v62, 0 }
 0x296   :  { %v802_v27 = vperm.slane %v794_v0, 0  ;;  %v803_v7 = vperm.slane %v795_v63, 0  ;;  %v813_v8 = vmul.f32 %v1669_v51, %v797_v2  ;;  %v820_v9 = vadd.f32 %v812_v3, %v777_v43 }
 0x297   :  { %v814_v28 = vmul.f32 %v1669_v51, %v798_v4  ;;  %v815_v25 = vmul.f32 %v1669_v51, %v799_v6  ;;  %v816_v13 = vmul.f32 %v1669_v51, %v800_v33  ;;  %v817_v14 = vmul.f32 %v1669_v51, %v801_v49 }
 0x298   :  { %v818_v41 = vmul.f32 %v1669_v51, %v802_v27  ;;  %v819_v18 = vmul.f32 %v1669_v51, %v803_v7  ;;  %v821_v22 = vadd.f32 %v813_v8, %v778_v11  ;;  %829 = vst.msk [vmem:[#allocation12] sm:$0x3] %vm828_vm13, %v820_v9  ;;  %v1236_v42 = vperm.slane %v747_v58, 5 }
 0x299   :  { %v822_v5 = vadd.f32 %v814_v28, %v779_v46  ;;  %v823_v26 = vadd.f32 %v815_v25, %v780_v48  ;;  %v824_v12 = vadd.f32 %v816_v13, %v781_v50  ;;  %v825_v47 = vadd.f32 %v817_v14, %v782_v16 }
 0x29a   :  { %830 = vst.msk [vmem:[#allocation12 + $0x2] sm:$0x3] %vm828_vm13, %v821_v22  ;;  %v1229_v31 = vperm.slane %v747_v58, 4  ;;  %v826_v45 = vadd.f32 %v818_v41, %v783_v24  ;;  %v1222_v32 = vperm.slane %v747_v58, 3  ;;  %v827_v1 = vadd.f32 %v819_v18, %v784_v29 }
 0x29b   :  { %831 = vst.msk [vmem:[#allocation12 + $0x4] sm:$0x3] %vm828_vm13, %v822_v5  ;;  %v1250_v30 = vperm.slane %v747_v58, 7  ;;  %v1243_v35 = vperm.slane %v747_v58, 6 }
 0x29c   :  { %832 = vst.msk [vmem:[#allocation12 + $0x6] sm:$0x3] %vm828_vm13, %v823_v26  ;;  %1241 = vperm.xlu2 %1690, %v1236_v42   ;;  %1234 = vperm.xlu0 %1691, %v1229_v31  }
 0x29d   :  { %833 = vst.msk [vmem:[#allocation12 + $0x8] sm:$0x3] %vm828_vm13, %v824_v12  ;;  %1227 = vperm.xlu1 %1689, %v1222_v32  }
 0x29e   :  { %834 = vst.msk [vmem:[#allocation12 + $0xa] sm:$0x3] %vm828_vm13, %v825_v47 }
 0x29f   :  { %835 = vst.msk [vmem:[#allocation12 + $0xc] sm:$0x3] %vm828_vm13, %v826_v45 }
 0x2a0   :  { %836 = vst.msk [vmem:[#allocation12 + $0xe] sm:$0x3] %vm828_vm13, %v827_v1 }
 0x2a4   :  { %1255 = vperm.xlu0 %1691, %v1250_v30  }
 0x2a5   :  { %1248 = vperm.xlu1 %1689, %v1243_v35  }
 0x2b6   :  { %v850_v36 = vpop.permute.xlu2 %849 }
 0x2b7   :  { %v894_v37 = vmul.f32 %v850_v36, %v2113_v39  ;;  %v960_v43 = vmul.f32 %v850_v36, %v2108_v38  ;;  %v1099_v44 = vmul.f32 %v850_v36, %v2177_v17 }
 0x2b9   :  { %v908_v11 = vsel %vm211_vm2, %v894_v37, 0.0  ;;  %v974_v46 = vsel %vm291_vm1, %v960_v43, 0.0  ;;  %v1113_v48 = vsel %vm291_vm1, %v1099_v44, 0.0 }
 0x2ba   :  { %v909_v50 = vrot.slane %v908_v11, 4  ;;  %v975_v52 = vrot.slane %v974_v46, 4  ;;  %v1114_v21 = vrot.slane %v1113_v48, 4 }
 0x2bc   :  { %v910_v51 = vadd.f32 %v909_v50, %v908_v11  ;;  %v976_v59 = vadd.f32 %v975_v52, %v974_v46  ;;  %v1115_v17 = vadd.f32 %v1114_v21, %v1113_v48  ;;  %v2438_v21 = vld [vmem:[%s2720_s2] sm:$0xff] }
 0x2be   :  { %v864_v58 = vpop.permute.xlu2 %863  ;;  %v911_v38 = vrot.slane %v910_v51, 2  ;;  %v977_v4 = vrot.slane %v976_v59, 2  ;;  %v1116_v6 = vrot.slane %v1115_v17, 2 }
 0x2bf   :  { %v896_v55 = vmul.f32 %v864_v58, %v2137_v54  ;;  %v962_v40 = vmul.f32 %v864_v58, %v2132_v53  ;;  %v1101_v39 = vmul.f32 %v864_v58, %v2230_v19 }
 0x2c0   :  { %v912_v3 = vadd.f32 %v911_v38, %v910_v51  ;;  %v978_v25 = vadd.f32 %v977_v4, %v976_v59  ;;  %v1117_v13 = vadd.f32 %v1116_v6, %v1115_v17  ;;  %v2432_v51 = vld [vmem:[%s2719_s1] sm:$0xff]  ;;  %v958_v6 = vld [vmem:[#allocation7 + $0x8] sm:$0xff] }
 0x2c1   :  { %v922_v57 = vsel %vm211_vm2, %v896_v55, 0.0  ;;  %v988_v60 = vsel %vm291_vm1, %v962_v40, 0.0  ;;  %v1127_v62 = vsel %vm291_vm1, %v1101_v39, 0.0  ;;  %1092 = vmatpush.msrb.mxu3 %v958_v6 }
 0x2c2   :  { %v923_v0 = vrot.slane %v922_v57, 4  ;;  %v989_v63 = vrot.slane %v988_v60, 4  ;;  %v1128_v2 = vrot.slane %v1127_v62, 4  ;;  %v913_v28 = vrot.slane %v912_v3, 1 }
 0x2c3   :  { %v1118_v31 = vrot.slane %v1117_v13, 1 }
 0x2c4   :  { %v924_v54 = vadd.f32 %v923_v0, %v922_v57  ;;  %v990_v33 = vadd.f32 %v989_v63, %v988_v60  ;;  %v1129_v53 = vadd.f32 %v1128_v2, %v1127_v62  ;;  %v2424_v42 = vadd.f32 %v913_v28, %v912_v3 }
 0x2c5   :  { %v2446_v17 = vadd.f32 %v1118_v31, %v1117_v13 }
 0x2c6   :  { %v925_v49 = vrot.slane %v924_v54, 2  ;;  %v878_v19 = vpop.permute.xlu2 %877  ;;  %v991_v27 = vrot.slane %v990_v33, 2  ;;  %v1130_v7 = vrot.slane %v1129_v53, 2 }
 0x2c7   :  { %v898_v8 = vmul.f32 %v878_v19, %v2183_v23  ;;  %v964_v9 = vmul.f32 %v878_v19, %v2167_v10  ;;  %v1103_v14 = vmul.f32 %v878_v19, %v2276_v34  ;;  %v979_v23 = vrot.slane %v978_v25, 1 }
 0x2c8   :  { %v926_v16 = vadd.f32 %v925_v49, %v924_v54  ;;  %v992_v41 = vadd.f32 %v991_v27, %v990_v33  ;;  %v1131_v24 = vadd.f32 %v1130_v7, %v1129_v53 }
 0x2c9   :  { %v936_v18 = vsel %vm211_vm2, %v898_v8, 0.0  ;;  %v1002_v22 = vsel %vm291_vm1, %v964_v9, 0.0  ;;  %v1141_v12 = vsel %vm291_vm1, %v1103_v14, 0.0  ;;  %v2444_v40 = vadd.f32 %v979_v23, %v978_v25  ;;  %v2464_v8 = vld [vmem:[%s2719_s1 + $0x10] sm:$0xff] }
 0x2ca   :  { %v937_v5 = vrot.slane %v936_v18, 4  ;;  %v1003_v26 = vrot.slane %v1002_v22, 4  ;;  %v1142_v29 = vrot.slane %v1141_v12, 4  ;;  %v927_v45 = vrot.slane %v926_v16, 1  ;;  %v2470_v14 = vld [vmem:[%s2720_s2 + $0x10] sm:$0xff] }
 0x2cb   :  { %v993_v32 = vrot.slane %v992_v41, 1  ;;  %v1132_v1 = vrot.slane %v1131_v24, 1 }
 0x2cc   :  { %v938_v47 = vadd.f32 %v937_v5, %v936_v18  ;;  %v1004_v10 = vadd.f32 %v1003_v26, %v1002_v22  ;;  %v1143_v34 = vadd.f32 %v1142_v29, %v1141_v12  ;;  %v2450_v63 = vadd.f32 %v927_v45, %v926_v16  ;;  %v2487_v45 = vld [vmem:[%s2719_s1 + $0x20] sm:$0xff] }
 0x2cd   :  { %v2452_v2 = vadd.f32 %v993_v32, %v992_v41  ;;  %v2454_v54 = vadd.f32 %v1132_v1, %v1131_v24 }
 0x2ce   :  { %v939_v30 = vrot.slane %v938_v47, 2  ;;  %v1005_v35 = vrot.slane %v1004_v10, 2  ;;  %v892_v36 = vpop.permute.xlu2 %891  ;;  %v1144_v37 = vrot.slane %v1143_v34, 2  ;;  %v857_v0 = vpop.permute.xlu0 %856 }
 0x2cf   :  { %v900_v43 = vmul.f32 %v892_v36, %v2225_v56  ;;  %v966_v44 = vmul.f32 %v892_v36, %v2213_v20  ;;  %v1105_v11 = vmul.f32 %v892_v36, %v2261_v15  ;;  %v843_v46 = vpop.permute.xlu1 %842  ;;  %v895_v9 = vmul.f32 %v2464_v8, %v857_v0 }
 0x2d0   :  { %v940_v48 = vadd.f32 %v939_v30, %v938_v47  ;;  %v1006_v50 = vadd.f32 %v1005_v35, %v1004_v10  ;;  %v893_v52 = vmul.f32 %v2432_v51, %v843_v46  ;;  %v959_v56 = vmul.f32 %v2438_v21, %v843_v46  ;;  %v2481_v10 = vld [vmem:[%s2721_s3 + $0x10] sm:$0xff] }
 0x2d1   :  { %v1145_v20 = vadd.f32 %v1144_v37, %v1143_v34  ;;  %v950_v15 = vsel %vm211_vm2, %v900_v43, 0.0  ;;  %v1016_v58 = vsel %vm291_vm1, %v966_v44, 0.0  ;;  %v1155_v55 = vsel %vm291_vm1, %v1105_v11, 0.0 }
 0x2d2   :  { %v941_v39 = vrot.slane %v940_v48, 1  ;;  %v1007_v38 = vrot.slane %v1006_v50, 1  ;;  %v951_v59 = vrot.slane %v950_v15, 4  ;;  %v1017_v57 = vrot.slane %v1016_v58, 4 }
 0x2d3   :  { %v901_v60 = vsel %vm211_vm2, %v893_v52, 0.0  ;;  %v967_v62 = vsel %vm291_vm1, %v959_v56, 0.0  ;;  %v1146_v3 = vrot.slane %v1145_v20, 1  ;;  %v1156_v4 = vrot.slane %v1155_v55, 4  ;;  %v1023_v52 = vld [vmem:[#allocation8] sm:$0xff] }
 0x2d4   :  { %v952_v33 = vadd.f32 %v951_v59, %v950_v15  ;;  %v902_v53 = vrot.slane %v901_v60, 4  ;;  %v968_v49 = vrot.slane %v967_v62, 4  ;;  %v2456_v19 = vadd.f32 %v941_v39, %v940_v48  ;;  %v957_v56 = vld [vmem:[#allocation7] sm:$0xff]  ;;  %1056 = vmatpush.msrb.mxu2 %v1023_v52 }
 0x2d5   :  { %v2458_v27 = vadd.f32 %v1007_v38, %v1006_v50  ;;  %v1098_v7 = vmul.f32 %v843_v46, %v2237_v61  ;;  %v1018_v28 = vadd.f32 %v1017_v57, %v1016_v58  ;;  %v961_v16 = vmul.f32 %v2470_v14, %v857_v0  ;;  %1093 = vmatpush.msrb.mxu3 %v957_v56  ;;  %v1162_v38 = vld [vmem:[#allocation10] sm:$0xff] }
 0x2d6   :  { %v903_v25 = vadd.f32 %v902_v53, %v901_v60  ;;  %v969_v13 = vadd.f32 %v968_v49, %v967_v62  ;;  %v2473_v18 = vadd.f32 %v1146_v3, %v1145_v20  ;;  %v1157_v61 = vadd.f32 %v1156_v4, %v1155_v55  ;;  %v2495_v55 = vld [vmem:[%s2720_s2 + $0x20] sm:$0xff]  ;;  %1195 = vmatpush.msra.mxu0 %v1162_v38 }
 0x2d7   :  { %v871_v41 = vpop.permute.xlu1 %870  ;;  %v1106_v22 = vsel %vm291_vm1, %v1098_v7, 0.0  ;;  %v915_v24 = vsel %vm211_vm2, %v895_v9, 0.0  ;;  %v953_v5 = vrot.slane %v952_v33, 2  ;;  %v981_v47 = vsel %vm291_vm1, %v961_v16, 0.0 }
 0x2d8   :  { %v904_v26 = vrot.slane %v903_v25, 2  ;;  %v970_v12 = vrot.slane %v969_v13, 2  ;;  %v1107_v29 = vrot.slane %v1106_v22, 4  ;;  %v916_v23 = vrot.slane %v915_v24, 4 }
 0x2d9   :  { %v1100_v31 = vmul.f32 %v2481_v10, %v857_v0  ;;  %v897_v34 = vmul.f32 %v2487_v45, %v871_v41  ;;  %v1019_v32 = vrot.slane %v1018_v28, 2  ;;  %v982_v37 = vrot.slane %v981_v47, 4 }
 0x2da   :  { %v905_v1 = vadd.f32 %v904_v26, %v903_v25  ;;  %v971_v30 = vadd.f32 %v970_v12, %v969_v13  ;;  %v1108_v35 = vadd.f32 %v1107_v29, %v1106_v22  ;;  %v917_v36 = vadd.f32 %v916_v23, %v915_v24 }
 0x2db   :  { %v1120_v43 = vsel %vm291_vm1, %v1100_v31, 0.0  ;;  %v929_v44 = vsel %vm211_vm2, %v897_v34, 0.0  ;;  %v1158_v11 = vrot.slane %v1157_v61, 2  ;;  %v983_v15 = vadd.f32 %v982_v37, %v981_v47 }
 0x2dc   :  { %v972_v46 = vrot.slane %v971_v30, 1  ;;  %v1109_v48 = vrot.slane %v1108_v35, 2  ;;  %v1121_v50 = vrot.slane %v1120_v43, 4  ;;  %v918_v20 = vrot.slane %v917_v36, 2 }
 0x2dd   :  { %v930_v58 = vrot.slane %v929_v44, 4  ;;  %v963_v39 = vmul.f32 %v2495_v55, %v871_v41  ;;  %v2498_v59 = vadd.f32 %v953_v5, %v952_v33  ;;  %v906_v57 = vrot.slane %v905_v1, 1 }
 0x2de   :  { %v1110_v60 = vadd.f32 %v1109_v48, %v1108_v35  ;;  %v1122_v62 = vadd.f32 %v1121_v50, %v1120_v43  ;;  %v2500_v0 = vadd.f32 %v1019_v32, %v1018_v28  ;;  %v984_v3 = vrot.slane %v983_v15, 2  ;;  %v2508_v28 = vld [vmem:[%s2721_s3 + $0x20] sm:$0xff] }
 0x2df   :  { %v931_v4 = vadd.f32 %v930_v58, %v929_v44  ;;  %v995_v6 = vsel %vm291_vm1, %v963_v39, 0.0  ;;  %v885_v53 = vpop.permute.xlu1 %884  ;;  %v2503_v49 = vadd.f32 %v1158_v11, %v1157_v61  ;;  %v973_v7 = vadd.f32 %v972_v46, %v971_v30  ;;  %v2514_v61 = vld [vmem:[%s2719_s1 + $0x30] sm:$0xff] }
 0x2e0   :  { %v1111_v9 = vrot.slane %v1110_v60, 1  ;;  %v1123_v25 = vrot.slane %v1122_v62, 2  ;;  %v919_v13 = vadd.f32 %v918_v20, %v917_v36  ;;  %v985_v16 = vadd.f32 %v984_v3, %v983_v15  ;;  %v2524_v11 = vld [vmem:[%s2720_s2 + $0x30] sm:$0xff] }
 0x2e1   :  { %v932_v33 = vrot.slane %v931_v4, 2  ;;  %v996_v22 = vrot.slane %v995_v6, 4  ;;  %v907_v24 = vadd.f32 %v906_v57, %v905_v1  ;;  %v1102_v26 = vmul.f32 %v2508_v28, %v871_v41 }
 0x2e2   :  { %v1124_v5 = vadd.f32 %v1123_v25, %v1122_v62  ;;  %v899_v12 = vmul.f32 %v2514_v61, %v885_v53  ;;  %v1112_v29 = vadd.f32 %v1111_v9, %v1110_v60  ;;  %v986_v23 = vrot.slane %v985_v16, 1 }
 0x2e3   :  { %v933_v47 = vadd.f32 %v932_v33, %v931_v4  ;;  %v997_v31 = vadd.f32 %v996_v22, %v995_v6  ;;  %v1032_v34 = vsel %vm429_vm3, %v2444_v40, %v973_v7  ;;  %v1134_v1 = vsel %vm291_vm1, %v1102_v26, 0.0  ;;  %v2530_v40 = vld [vmem:[%s2721_s3 + $0x30] sm:$0xff] }
 0x2e4   :  { %v1125_v32 = vrot.slane %v1124_v5, 1  ;;  %v943_v30 = vsel %vm211_vm2, %v899_v12, 0.0  ;;  %v920_v41 = vrot.slane %v919_v13, 1  ;;  %v987_v35 = vadd.f32 %v986_v23, %v985_v16 }
 0x2e5   :  { %v998_v36 = vrot.slane %v997_v31, 2  ;;  %v1135_v37 = vrot.slane %v1134_v1, 4  ;;  %v934_v43 = vrot.slane %v933_v47, 1  ;;  %v944_v44 = vrot.slane %v943_v30, 4 }
 0x2e6   :  { %v965_v46 = vmul.f32 %v2524_v11, %v885_v53  ;;  %v1104_v48 = vmul.f32 %v2530_v40, %v885_v53  ;;  %v1069_v50 = vsel %vm429_vm3, %v2424_v42, %v907_v24  ;;  %v1171_v52 = vsel %vm429_vm3, %v2446_v17, %v1112_v29 }
 0x2e7   :  { %v999_v56 = vadd.f32 %v998_v36, %v997_v31  ;;  %v1136_v20 = vadd.f32 %v1135_v37, %v1134_v1  ;;  %v1126_v15 = vadd.f32 %v1125_v32, %v1124_v5  ;;  %v945_v58 = vadd.f32 %v944_v44, %v943_v30 }
 0x2e8   :  { %v1009_v39 = vsel %vm291_vm1, %v965_v46, 0.0  ;;  %v1148_v38 = vsel %vm291_vm1, %v1104_v48, 0.0  ;;  %v921_v4 = vadd.f32 %v920_v41, %v919_v13  ;;  %v935_v6 = vadd.f32 %v934_v43, %v933_v47 }
 0x2e9   :  { %v1000_v57 = vrot.slane %v999_v56, 1  ;;  %v1137_v60 = vrot.slane %v1136_v20, 2  ;;  %v1010_v62 = vrot.slane %v1009_v39, 4  ;;  %v1149_v3 = vrot.slane %v1148_v38, 4 }
 0x2ea   :  { %v946_v53 = vrot.slane %v945_v58, 2  ;;  %v1033_v42 = vsel %vm431_vm4, %v987_v35, %v1032_v34  ;;  %v1172_v16 = vsel %vm431_vm4, %v1126_v15, %v1171_v52  ;;  %v1021_v22 = vrot.slane %v2500_v0, 1 }
 0x2eb   :  { %v1001_v7 = vadd.f32 %v1000_v57, %v999_v56  ;;  %v1138_v9 = vadd.f32 %v1137_v60, %v1136_v20  ;;  %v1011_v17 = vadd.f32 %v1010_v62, %v1009_v39  ;;  %v1150_v25 = vadd.f32 %v1149_v3, %v1148_v38 }
 0x2ec   :  { %v947_v33 = vadd.f32 %v946_v53, %v945_v58  ;;  %v955_v24 = vrot.slane %v2498_v59, 1  ;;  %v1034_v13 = vsel %vm433_vm5, %v2452_v2, %v1033_v42  ;;  %v1070_v41 = vsel %vm431_vm4, %v921_v4, %v1069_v50 }
 0x2ed   :  { %v1139_v5 = vrot.slane %v1138_v9, 1  ;;  %v1012_v26 = vrot.slane %v1011_v17, 2  ;;  %v1151_v12 = vrot.slane %v1150_v25, 2  ;;  %v1035_v30 = vsel %vm435_vm6, %v1001_v7, %v1034_v13  ;;  %v1718_v7 = vld [vmem:[%s2719_s1 + $0x28] sm:$0xff] }
 0x2ee   :  { %v1221_v29 = vpop.permute.xlu2 %1220  ;;  %v948_v23 = vrot.slane %v947_v33, 1  ;;  %v956_v52 = vadd.f32 %v955_v24, %v2498_v59  ;;  %v1071_v20 = vsel %vm433_vm5, %v2450_v63, %v1070_v41  ;;  %v1173_v15 = vsel %vm433_vm5, %v2454_v54, %v1172_v16  ;;  %v1720_v16 = vld [vmem:[%s2721_s3 + $0x28] sm:$0xff] }
 0x2ef   :  { %v1259_v47 = vmul.f32 %v2464_v8, %v1221_v29  ;;  %v1364_v31 = vmul.f32 %v2470_v14, %v1221_v29  ;;  %v1468_v34 = vmul.f32 %v2481_v10, %v1221_v29  ;;  %v1013_v32 = vadd.f32 %v1012_v26, %v1011_v17 }
 0x2f0   :  { %v1152_v1 = vadd.f32 %v1151_v12, %v1150_v25  ;;  %v1140_v35 = vadd.f32 %v1139_v5, %v1138_v9  ;;  %v1160_v14 = vrot.slane %v2503_v49, 1  ;;  %v1022_v10 = vadd.f32 %v1021_v22, %v2500_v0 }
 0x2f1   :  { %v1279_v36 = vsel %vm211_vm2, %v1259_v47, 0.0  ;;  %v1384_v37 = vsel %vm291_vm1, %v1364_v31, 0.0  ;;  %v1488_v2 = vsel %vm291_vm1, %v1468_v34, 0.0  ;;  %v1014_v43 = vrot.slane %v1013_v32, 1 }
 0x2f2   :  { %v1153_v44 = vrot.slane %v1152_v1, 1  ;;  %v1280_v8 = vrot.slane %v1279_v36, 4  ;;  %v1385_v46 = vrot.slane %v1384_v37, 4  ;;  %v949_v48 = vadd.f32 %v948_v23, %v947_v33 }
 0x2f3   :  { %v1015_v50 = vadd.f32 %v1014_v43, %v1013_v32  ;;  %v1489_v58 = vrot.slane %v1488_v2, 4  ;;  %v1036_v39 = vsel %vm437_vm7, %v2458_v27, %v1035_v30  ;;  %v1072_v38 = vsel %vm435_vm6, %v935_v6, %v1071_v20  ;;  %v1723_v20 = vld [vmem:[%s2721_s3 + $0x8] sm:$0xff] }
 0x2f4   :  { %v1154_v56 = vadd.f32 %v1153_v44, %v1152_v1  ;;  %v1174_v57 = vsel %vm435_vm6, %v1140_v35, %v1173_v15  ;;  %v1281_v0 = vadd.f32 %v1280_v8, %v1279_v36  ;;  %v1386_v60 = vadd.f32 %v1385_v46, %v1384_v37 }
 0x2f5   :  { %v1037_v59 = vsel %vm439_vm8, %v1015_v50, %v1036_v39  ;;  %v1073_v62 = vsel %vm437_vm7, %v2456_v19, %v1072_v38  ;;  %v1161_v4 = vadd.f32 %v1160_v14, %v2503_v49  ;;  %v1175_v27 = vsel %vm437_vm7, %v2473_v18, %v1174_v57  ;;  %v1719_v18 = vld [vmem:[%s2720_s2 + $0x28] sm:$0xff]  ;;  %v1724_v57 = vld [vmem:[%s2721_s3] sm:$0xff] }
 0x2f6   :  { %v1242_v3 = vpop.permute.xlu2 %1241  ;;  %v1038_v63 = vsel %vm441_vm9, %v1022_v10, %v1037_v59  ;;  %v1074_v54 = vsel %vm439_vm8, %v949_v48, %v1073_v62  ;;  %v1176_v53 = vsel %vm439_vm8, %v1154_v56, %v1175_v27  ;;  %v1490_v42 = vadd.f32 %v1489_v58, %v1488_v2  ;;  %v1721_v48 = vld [vmem:[%s2719_s1 + $0x8] sm:$0xff] }
 0x2f7   :  { %1670 = vmatmul.msk.f32.vlgmr.msrb.gmra.mxu2 %vm291_vm1, %v1038_v63  ;;  %v1075_v6 = vsel %vm441_vm9, %v956_v52, %v1074_v54  ;;  %v1177_v19 = vsel %vm441_vm9, %v1161_v4, %v1176_v53  ;;  %v1262_v9 = vmul.f32 %v1718_v7, %v1242_v3  ;;  %v1367_v49 = vmul.f32 %v1719_v18, %v1242_v3  ;;  %v1722_v56 = vld [vmem:[%s2720_s2 + $0x8] sm:$0xff] }
 0x2f8   :  { %1671 = vmatmul.msk.f32.vlgmr.msrb.gmra.mxu3 %vm211_vm2, %v1075_v6  ;;  %v1282_v17 = vrot.slane %v1281_v0, 2  ;;  %v1387_v25 = vrot.slane %v1386_v60, 2  ;;  %1672 = vmatmul.msk.f32.vlgmr.msra.gmra.mxu0 %vm291_vm1, %v1177_v19  ;;  %v1471_v33 = vmul.f32 %v1720_v16, %v1242_v3  ;;  %v1491_v12 = vrot.slane %v1490_v42, 2 }
 0x2f9   :  { %v1300_v22 = vsel %vm211_vm2, %v1262_v9, 0.0  ;;  %v1405_v24 = vsel %vm291_vm1, %v1367_v49, 0.0 }
 0x2fa   :  { %v1301_v5 = vrot.slane %v1300_v22, 4  ;;  %v1406_v26 = vrot.slane %v1405_v24, 4  ;;  %v1509_v29 = vsel %vm291_vm1, %v1471_v33, 0.0  ;;  %v1283_v13 = vadd.f32 %v1282_v17, %v1281_v0 }
 0x2fb   :  { %v1388_v23 = vadd.f32 %v1387_v25, %v1386_v60  ;;  %v1510_v34 = vrot.slane %v1509_v29, 4  ;;  %v1492_v35 = vadd.f32 %v1491_v12, %v1490_v42 }
 0x2fc   :  { %v1302_v47 = vadd.f32 %v1301_v5, %v1300_v22  ;;  %v1407_v31 = vadd.f32 %v1406_v26, %v1405_v24  ;;  %v1284_v30 = vrot.slane %v1283_v13, 1 }
 0x2fd   :  { %v1389_v41 = vrot.slane %v1388_v23, 1  ;;  %v1511_v36 = vadd.f32 %v1510_v34, %v1509_v29  ;;  %v1493_v8 = vrot.slane %v1492_v35, 1 }
 0x2fe   :  { %v1303_v32 = vrot.slane %v1302_v47, 2  ;;  %v1408_v1 = vrot.slane %v1407_v31, 2  ;;  %v2590_v43 = vadd.f32 %v1284_v30, %v1283_v13 }
 0x2ff   :  { %v2592_v44 = vadd.f32 %v1389_v41, %v1388_v23  ;;  %v1512_v14 = vrot.slane %v1511_v36, 2  ;;  %v2614_v42 = vadd.f32 %v1493_v8, %v1492_v35 }
 0x300   :  { %v1304_v37 = vadd.f32 %v1303_v32, %v1302_v47  ;;  %v1409_v2 = vadd.f32 %v1408_v1, %v1407_v31  ;;  %v1725_v31 = vld [vmem:[%s2719_s1 + $0x18] sm:$0xff] }
 0x301   :  { %v2616_v19 = vadd.f32 %v1512_v14, %v1511_v36  ;;  %v1726_v32 = vld [vmem:[%s2720_s2 + $0x18] sm:$0xff] }
 0x302   :  { %v1305_v58 = vrot.slane %v1304_v37, 1  ;;  %v1410_v60 = vrot.slane %v1409_v2, 1 }
 0x304   :  { %v2618_v16 = vadd.f32 %v1305_v58, %v1304_v37  ;;  %v2620_v33 = vadd.f32 %v1410_v60, %v1409_v2  ;;  %v1514_v60 = vrot.slane %v2616_v19, 1 }
 0x306   :  { %v1214_v46 = vpop.permute.xlu0 %1213 }
 0x307   :  { %v1207_v10 = vpop.permute.xlu1 %1206  ;;  %v1258_v52 = vmul.f32 %v1721_v48, %v1214_v46  ;;  %v1363_v50 = vmul.f32 %v1722_v56, %v1214_v46  ;;  %v1467_v15 = vmul.f32 %v1723_v20, %v1214_v46  ;;  %v1531_v20 = vld [vmem:[#allocation10 + $0x8] sm:$0xff] }
 0x308   :  { %v1257_v39 = vmul.f32 %v2432_v51, %v1207_v10  ;;  %v1362_v38 = vmul.f32 %v2438_v21, %v1207_v10  ;;  %v1466_v0 = vmul.f32 %v1724_v57, %v1207_v10  ;;  %1564 = vmatpush.msra.mxu3 %v1531_v20  ;;  %v1323_v57 = vld [vmem:[#allocation7 + $0x18] sm:$0xff]  ;;  %v1728_v20 = vld [vmem:[%s2719_s1 + $0x38] sm:$0xff] }
 0x309   :  { %v1272_v59 = vsel %vm211_vm2, %v1258_v52, 0.0  ;;  %v1377_v62 = vsel %vm291_vm1, %v1363_v50, 0.0  ;;  %v1481_v3 = vsel %vm291_vm1, %v1467_v15, 0.0  ;;  %v1427_v50 = vld [vmem:[#allocation8 + $0x8] sm:$0xff]  ;;  %1355 = vmatpush.msra.mxu1 %v1323_v57 }
 0x30a   :  { %v1265_v63 = vsel %vm211_vm2, %v1257_v39, 0.0  ;;  %v1370_v54 = vsel %vm291_vm1, %v1362_v38, 0.0  ;;  %v1474_v51 = vsel %vm291_vm1, %v1466_v0, 0.0  ;;  %v1273_v4 = vrot.slane %v1272_v59, 4  ;;  %1460 = vmatpush.msra.mxu2 %v1427_v50  ;;  %v1322_v0 = vld [vmem:[#allocation7 + $0x10] sm:$0xff] }
 0x30b   :  { %v1266_v21 = vrot.slane %v1265_v63, 4  ;;  %v1371_v27 = vrot.slane %v1370_v54, 4  ;;  %v1475_v6 = vrot.slane %v1474_v51, 4  ;;  %v1378_v53 = vrot.slane %v1377_v62, 4  ;;  %1356 = vmatpush.msra.mxu1 %v1322_v0 }
 0x30c   :  { %v1274_v7 = vadd.f32 %v1273_v4, %v1272_v59  ;;  %v1482_v9 = vrot.slane %v1481_v3, 4  ;;  %v1727_v4 = vld [vmem:[%s2721_s3 + $0x18] sm:$0xff] }
 0x30d   :  { %v1267_v18 = vadd.f32 %v1266_v21, %v1265_v63  ;;  %v1372_v49 = vadd.f32 %v1371_v27, %v1370_v54  ;;  %v1476_v17 = vadd.f32 %v1475_v6, %v1474_v51  ;;  %v1379_v25 = vadd.f32 %v1378_v53, %v1377_v62 }
 0x30e   :  { %v1275_v22 = vrot.slane %v1274_v7, 2  ;;  %v1483_v24 = vadd.f32 %v1482_v9, %v1481_v3  ;;  %v1235_v56 = vpop.permute.xlu0 %1234 }
 0x30f   :  { %v1268_v5 = vrot.slane %v1267_v18, 2  ;;  %v1373_v26 = vrot.slane %v1372_v49, 2  ;;  %v1477_v12 = vrot.slane %v1476_v17, 2  ;;  %v1380_v29 = vrot.slane %v1379_v25, 2  ;;  %v1228_v13 = vpop.permute.xlu1 %1227 }
 0x310   :  { %v1276_v23 = vadd.f32 %v1275_v22, %v1274_v7  ;;  %v1484_v47 = vrot.slane %v1483_v24, 2  ;;  %v1260_v34 = vmul.f32 %v1725_v31, %v1228_v13  ;;  %v1365_v1 = vmul.f32 %v1726_v32, %v1228_v13 }
 0x311   :  { %v1269_v30 = vadd.f32 %v1268_v5, %v1267_v18  ;;  %v1374_v41 = vadd.f32 %v1373_v26, %v1372_v49  ;;  %v1478_v35 = vadd.f32 %v1477_v12, %v1476_v17  ;;  %v1381_v36 = vadd.f32 %v1380_v29, %v1379_v25 }
 0x312   :  { %v1277_v37 = vrot.slane %v1276_v23, 1  ;;  %v1485_v2 = vadd.f32 %v1484_v47, %v1483_v24  ;;  %v1286_v8 = vsel %vm211_vm2, %v1260_v34, 0.0  ;;  %v1391_v46 = vsel %vm291_vm1, %v1365_v1, 0.0 }
 0x313   :  { %v1270_v14 = vrot.slane %v1269_v30, 1  ;;  %v1375_v10 = vrot.slane %v1374_v41, 1  ;;  %v1479_v48 = vrot.slane %v1478_v35, 1  ;;  %v1382_v52 = vrot.slane %v1381_v36, 1 }
 0x314   :  { %v1278_v15 = vadd.f32 %v1277_v37, %v1276_v23  ;;  %v1486_v58 = vrot.slane %v1485_v2, 1  ;;  %v1287_v39 = vrot.slane %v1286_v8, 4  ;;  %v1392_v38 = vrot.slane %v1391_v46, 4 }
 0x315   :  { %v1271_v59 = vadd.f32 %v1270_v14, %v1269_v30  ;;  %v1376_v62 = vadd.f32 %v1375_v10, %v1374_v41  ;;  %v1383_v3 = vadd.f32 %v1382_v52, %v1381_v36  ;;  %v1480_v63 = vadd.f32 %v1479_v48, %v1478_v35 }
 0x316   :  { %v1288_v54 = vadd.f32 %v1287_v39, %v1286_v8  ;;  %v1393_v51 = vadd.f32 %v1392_v38, %v1391_v46  ;;  %v1469_v21 = vmul.f32 %v1727_v4, %v1228_v13  ;;  %v1487_v6 = vadd.f32 %v1486_v58, %v1485_v2  ;;  %v1256_v37 = vpop.permute.xlu0 %1255 }
 0x317   :  { %v2635_v27 = vsel %vm429_vm3, %v1278_v15, %v1271_v59  ;;  %v1261_v53 = vmul.f32 %v2487_v45, %v1235_v56  ;;  %v1366_v7 = vmul.f32 %v2495_v55, %v1235_v56  ;;  %v2640_v9 = vsel %vm429_vm3, %v1383_v3, %v1376_v62  ;;  %v1249_v25 = vpop.permute.xlu1 %1248 }
 0x318   :  { %v1289_v18 = vrot.slane %v1288_v54, 2  ;;  %v1394_v49 = vrot.slane %v1393_v51, 2  ;;  %v1495_v17 = vsel %vm291_vm1, %v1469_v21, 0.0  ;;  %v1470_v26 = vmul.f32 %v2508_v28, %v1235_v56 }
 0x319   :  { %v1496_v22 = vrot.slane %v1495_v17, 4  ;;  %v1293_v24 = vsel %vm211_vm2, %v1261_v53, 0.0  ;;  %v1398_v5 = vsel %vm291_vm1, %v1366_v7, 0.0  ;;  %v1263_v47 = vmul.f32 %v2514_v61, %v1249_v25 }
 0x31a   :  { %v1290_v12 = vadd.f32 %v1289_v18, %v1288_v54  ;;  %v1395_v45 = vadd.f32 %v1394_v49, %v1393_v51  ;;  %v1294_v29 = vrot.slane %v1293_v24, 4  ;;  %v1399_v55 = vrot.slane %v1398_v5, 4 }
 0x31b   :  { %v1497_v13 = vadd.f32 %v1496_v22, %v1495_v17  ;;  %v1502_v23 = vsel %vm291_vm1, %v1470_v26, 0.0  ;;  %v1368_v31 = vmul.f32 %v2524_v11, %v1249_v25  ;;  %v2650_v34 = vsel %vm429_vm3, %v1487_v6, %v1480_v63  ;;  %v1729_v17 = vld [vmem:[%s2720_s2 + $0x38] sm:$0xff] }
 0x31c   :  { %v1291_v32 = vrot.slane %v1290_v12, 1  ;;  %v1295_v1 = vadd.f32 %v1294_v29, %v1293_v24  ;;  %v1400_v30 = vadd.f32 %v1399_v55, %v1398_v5  ;;  %v1503_v35 = vrot.slane %v1502_v23, 4  ;;  %v1730_v26 = vld [vmem:[%s2721_s3 + $0x38] sm:$0xff] }
 0x31d   :  { %v1498_v41 = vrot.slane %v1497_v13, 2  ;;  %v1307_v28 = vsel %vm211_vm2, %v1263_v47, 0.0  ;;  %v1412_v36 = vsel %vm291_vm1, %v1368_v31, 0.0  ;;  %v1396_v8 = vrot.slane %v1395_v45, 1 }
 0x31e   :  { %v1292_v2 = vadd.f32 %v1291_v32, %v1290_v12  ;;  %v1296_v46 = vrot.slane %v1295_v1, 2  ;;  %v1401_v14 = vrot.slane %v1400_v30, 2  ;;  %v1504_v10 = vadd.f32 %v1503_v35, %v1502_v23 }
 0x31f   :  { %v1499_v61 = vadd.f32 %v1498_v41, %v1497_v13  ;;  %v1308_v11 = vrot.slane %v1307_v28, 4  ;;  %v1413_v48 = vrot.slane %v1412_v36, 4  ;;  %v1472_v50 = vmul.f32 %v2530_v40, %v1249_v25 }
 0x320   :  { %v1297_v52 = vadd.f32 %v1296_v46, %v1295_v1  ;;  %v1402_v56 = vadd.f32 %v1401_v14, %v1400_v30  ;;  %v1264_v15 = vmul.f32 %v1728_v20, %v1256_v37  ;;  %v1505_v39 = vrot.slane %v1504_v10, 2 }
 0x321   :  { %v1500_v58 = vrot.slane %v1499_v61, 1  ;;  %v1309_v38 = vadd.f32 %v1308_v11, %v1307_v28  ;;  %v1414_v57 = vadd.f32 %v1413_v48, %v1412_v36  ;;  %v1516_v62 = vsel %vm291_vm1, %v1472_v50, 0.0 }
 0x322   :  { %v1298_v0 = vrot.slane %v1297_v52, 1  ;;  %v1403_v59 = vrot.slane %v1402_v56, 1  ;;  %v1314_v3 = vsel %vm211_vm2, %v1264_v15, 0.0  ;;  %v1397_v63 = vadd.f32 %v1396_v8, %v1395_v45 }
 0x323   :  { %v1506_v54 = vadd.f32 %v1505_v39, %v1504_v10  ;;  %v1310_v51 = vrot.slane %v1309_v38, 2  ;;  %v1415_v4 = vrot.slane %v1414_v57, 2  ;;  %v1501_v40 = vadd.f32 %v1500_v58, %v1499_v61 }
 0x324   :  { %v1299_v21 = vadd.f32 %v1298_v0, %v1297_v52  ;;  %v1517_v6 = vrot.slane %v1516_v62, 4  ;;  %v1315_v53 = vrot.slane %v1314_v3, 4  ;;  %v1369_v25 = vmul.f32 %v1729_v17, %v1256_v37 }
 0x325   :  { %v1507_v7 = vrot.slane %v1506_v54, 1  ;;  %v1311_v18 = vadd.f32 %v1310_v51, %v1309_v38  ;;  %v1416_v49 = vadd.f32 %v1415_v4, %v1414_v57  ;;  %v1404_v22 = vadd.f32 %v1403_v59, %v1402_v56 }
 0x326   :  { %v1518_v24 = vadd.f32 %v1517_v6, %v1516_v62  ;;  %v1316_v5 = vadd.f32 %v1315_v53, %v1314_v3  ;;  %v1473_v12 = vmul.f32 %v1730_v26, %v1256_v37  ;;  %v1419_v55 = vsel %vm291_vm1, %v1369_v25, 0.0 }
 0x327   :  { %v1312_v45 = vrot.slane %v1311_v18, 1  ;;  %v1417_v29 = vrot.slane %v1416_v49, 1  ;;  %v1333_v13 = vsel %vm431_vm4, %v2590_v43, %v2635_v27  ;;  %v1420_v31 = vrot.slane %v1419_v55, 4 }
 0x328   :  { %v1519_v23 = vrot.slane %v1518_v24, 2  ;;  %v1317_v47 = vrot.slane %v1316_v5, 2  ;;  %v1523_v32 = vsel %vm291_vm1, %v1473_v12, 0.0  ;;  %v1508_v1 = vadd.f32 %v1507_v7, %v1506_v54 }
 0x329   :  { %v1313_v30 = vadd.f32 %v1312_v45, %v1311_v18  ;;  %v1524_v41 = vrot.slane %v1523_v32, 4  ;;  %v1334_v35 = vsel %vm433_vm5, %v1292_v2, %v1333_v13  ;;  %v1421_v37 = vadd.f32 %v1420_v31, %v1419_v55  ;;  %v1692_v18 = vld [vmem:[%s2729_s11] ss:$0 sm:$0xff]  ;;  %s1919_s11 = smov [#allocation12]  }
 0x32a   :  { %v1520_v28 = vadd.f32 %v1519_v23, %v1518_v24  ;;  %v1318_v36 = vadd.f32 %v1317_v47, %v1316_v5  ;;  %v1335_v8 = vsel %vm435_vm6, %v1299_v21, %v1334_v35  ;;  %v1418_v46 = vadd.f32 %v1417_v29, %v1416_v49  ;;  %s1631_s0 = sshll.u32 %s1919_s11, 4  ;;  %s1632_s0 = int_to_ptr.vmem [resolvable:$true] %s1631_s0 }
 0x32b   :  { %v1525_v14 = vadd.f32 %v1524_v41, %v1523_v32  ;;  %v1336_v43 = vsel %vm437_vm7, %v2618_v16, %v1335_v8  ;;  %v1437_v27 = vsel %vm431_vm4, %v2592_v44, %v2640_v9  ;;  %v1422_v11 = vrot.slane %v1421_v37, 2  ;;  %1639 = dma.vmem_to_hbm [thread:$0]  %s1632_s0, 256, %s1634_s25, [#allocation13], %s1920_s8, %s1920_s8, %s1921_s27  }
 0x32c   :  { %v1521_v61 = vrot.slane %v1520_v28, 1  ;;  %v1319_v10 = vrot.slane %v1318_v36, 1  ;;  %v1541_v2 = vsel %vm431_vm4, %v2614_v42, %v2650_v34  ;;  %v1337_v52 = vsel %vm439_vm8, %v1313_v30, %v1336_v43 }
 0x32d   :  { %v1526_v48 = vrot.slane %v1525_v14, 2  ;;  %v1438_v56 = vsel %vm433_vm5, %v1397_v63, %v1437_v27  ;;  %v1542_v50 = vsel %vm433_vm5, %v1501_v40, %v1541_v2  ;;  %v1423_v15 = vadd.f32 %v1422_v11, %v1421_v37  ;;  %v1693_v27 = vld [vmem:[%s2730_s12] ss:$0 sm:$0xff] }
 0x32e   :  { %v1522_v20 = vadd.f32 %v1521_v61, %v1520_v28  ;;  %v1320_v16 = vadd.f32 %v1319_v10, %v1318_v36  ;;  %v1439_v58 = vsel %vm435_vm6, %v1404_v22, %v1438_v56  ;;  %v1515_v44 = vadd.f32 %v1514_v60, %v2616_v19  ;;  %v1731_v22 = vld [vmem:[#allocation2] sm:$0xff] }
 0x32f   :  { %v1527_v9 = vadd.f32 %v1526_v48, %v1525_v14  ;;  %v1543_v39 = vsel %vm435_vm6, %v1508_v1, %v1542_v50  ;;  %v1424_v42 = vrot.slane %v1423_v15, 1  ;;  %v1440_v38 = vsel %vm437_vm7, %v2620_v33, %v1439_v58  ;;  %v1694_v11 = vld [vmem:[%s2731_s13] ss:$0 sm:$0xff] }
 0x330   :  { %v1338_v34 = vsel %vm441_vm9, %v1320_v16, %v1337_v52  ;;  %v1441_v0 = vsel %vm439_vm8, %v1418_v46, %v1440_v38  ;;  %v1544_v59 = vsel %vm437_vm7, %v1515_v44, %v1543_v39  ;;  %v1918_v26 = vmov 24.0  }
 0x331   :  { %v1528_v57 = vrot.slane %v1527_v9, 1  ;;  %1673 = vmatmul.msk.f32.vlgmr.msra.gmra.mxu1 %vm211_vm2, %v1338_v34  ;;  %v1425_v62 = vadd.f32 %v1424_v42, %v1423_v15  ;;  %v1545_v3 = vsel %vm439_vm8, %v1522_v20, %v1544_v59  ;;  %1703 = vrcp.f32 %v1918_v26 }
 0x333   :  { %v1529_v19 = vadd.f32 %v1528_v57, %v1527_v9  ;;  %v1442_v60 = vsel %vm441_vm9, %v1425_v62, %v1441_v0 }
 0x334   :  { %1674 = vmatmul.msk.f32.vlgmr.msra.gmra.mxu2 %vm291_vm1, %v1442_v60 }
 0x335   :  { %v1546_v63 = vsel %vm441_vm9, %v1529_v19, %v1545_v3 }
 0x336   :  { %1675 = vmatmul.msk.f32.vlgmr.msra.gmra.mxu3 %vm291_vm1, %v1546_v63 }
 0x337   :  { %v1704_v12 = vpop.eup %1703 }
 0x338   :  { %v1580_v45 = vmul.f32 24.0, %v1704_v12  ;;  %vm1584_vm14 = vweird.f32 %v1704_v12 }
 0x33a   :  { %v1581_v29 = vsub.f32 1.0, %v1580_v45 }
 0x33c   :  { %v1582_v55 = vmul.f32 %v1704_v12, %v1581_v29 }
 0x33e   :  { %v1583_v13 = vadd.f32 %v1704_v12, %v1582_v55 }
 0x340   :  { %v1585_v23 = vsel %vm1584_vm14, %v1704_v12, %v1583_v13 }
 0x375   :  { %v1197_v4 = vpop.f32.mrf.mxu0 }
 0x37a   :  { %v1058_v33 = vpop.f32.mrf.mxu2 }
 0x37b   :  { %v1095_v54 = vpop.f32.mrf.mxu3 }
 0x37c   :  { %v1096_v51 = vadd.f32 %v1095_v54, %v1058_v33 }
 0x37e   :  { %v1200_v21 = vadd.f32 %v1197_v4, %v1096_v51 }
 0x3ae   :  { %v1358_v40 = vpop.f32.mrf.mxu1 }
 0x3af   :  { %v1361_v6 = vadd.f32 %v1358_v40, %v1200_v21 }
 0x3b7   :  { %v1462_v53 = vpop.f32.mrf.mxu2 }
 0x3b8   :  { %v1465_v7 = vadd.f32 %v1462_v53, %v1361_v6 }
 0x3b9   :  { %v1566_v49 = vpop.f32.mrf.mxu3 }
 0x3ba   :  { %v1569_v17 = vadd.f32 %v1566_v49, %v1465_v7 }
 0x3bc   :  { %v1574_v25 = vadd.f32 %v1692_v18, %v1569_v17 }
 0x3be   :  { %v1575_v24 = vadd.f32 %v1731_v22, %v1574_v25 }
 0x3c0   :  { %v1576_v5 = vsel %vm155_vm0, %v1575_v24, 0.0 }
 0x3c1   :  { %1577 = vadd.xlane.f32.xlu2 %v1576_v5 }
 0x434   :  { %v1578_v47 = vpop.xlane.xlu2 %1577 }
 0x435   :  { %v1586_v31 = vmul.f32 %v1585_v23, %v1578_v47 }
 0x437   :  { %v1587_v32 = vsub.f32 %v1575_v24, %v1586_v31 }
 0x439   :  { %v1588_v1 = vmul.f32 %v1587_v32, %v1587_v32 }
 0x43b   :  { %v1589_v30 = vsel %vm155_vm0, %v1588_v1, 0.0 }
 0x43c   :  { %1590 = vadd.xlane.f32.xlu1 %v1589_v30 }
 0x4af   :  { %v1591_v41 = vpop.xlane.xlu1 %1590 }
 0x4b0   :  { %v1592_v35 = vmul.f32 %v1591_v41, %v1585_v23 }
 0x4b2   :  { %v1593_v28 = vadd.f32 1e-05, %v1592_v35 }
 0x4b4   :  { %1705 = vrsqrt.f32 %v1593_v28  ;;  %vm1600_vm1 = vweird.f32 %v1593_v28 }
 0x4ba   :  { %v1706_v36 = vpop.eup %1705 }
 0x4bb   :  { %v1595_v37 = vmul.f32 %v1706_v36, %v1593_v28  ;;  %vm1601_vm15 = vweird.f32 %v1706_v36 }
 0x4bc   :  { %vm1602_vm2 = vmor %vm1600_vm1, %vm1601_vm15 }
 0x4bd   :  { %v1596_v8 = vmul.f32 %v1706_v36, %v1595_v37 }
 0x4bf   :  { %v1597_v46 = vmul.f32 0.5, %v1596_v8 }
 0x4c1   :  { %v1598_v14 = vsub.f32 1.5, %v1597_v46 }
 0x4c3   :  { %v1599_v43 = vmul.f32 %v1706_v36, %v1598_v14 }
 0x4c5   :  { %v1603_v61 = vsel %vm1602_vm2, %v1706_v36, %v1599_v43 }
 0x4c6   :  { %v1604_v10 = vmul.f32 %v1603_v61, %v1587_v32 }
 0x4c8   :  { %v1609_v2 = vmul.f32 %v1693_v27, %v1604_v10 }
 0x4ca   :  { %v1614_v48 = vadd.f32 %v1694_v11, %v1609_v2 }
 0x4cc   :  { %1615 = vst.msk [vmem:[#allocation11] sm:$0xff] %vm155_vm0, %v1614_v48 }
 0x4cd   :  { %1626 = dma.vmem_to_hbm [thread:$0]  %s1622_s4, 128, %s1624_s17, [#allocation4]  }
 0x4ce   :  { %1906 = dma.done.wait [#allocation4], 128  }
 0x4cf   :  { %1907 = vsyncadd [#allocation4], 4294967168 }
 0x4d0   :  { %1908 = dma.done.wait [#allocation13], 256  }
 0x4d1   :  { %1909 = vsyncadd [#allocation13], 4294967040 }
 0x4d2   :  { %1648 = vsyncpa [#allocation3], 1 }
 0x4d3   :  { %1649 = vsyncpa [#allocation6], 1 }
 0x4d4   :  { %1650 = vsyncpa [#allocation9], 1 }
 0x4d5   :  { %1651 = vsyncpa [#allocation4], 1 }
 0x4d6   :  { %1652 = vsyncpa [#allocation13], 1 }

</bundles_post_ra>
